<compile_context>
chip_gen: v6e
topology: v6e:2x2x1
jax: 0.10.0
libtpu: 0.0.40
codegen_flags: <defaults>
</compile_context>

<pallas_src>
import numpy as np
from itertools import combinations

import jax
import jax.numpy as jnp
from jax.experimental import pallas as pl
from jax.experimental.pallas import tpu as pltpu


# ----------------------------------------------------------------------------
# helpers
# ----------------------------------------------------------------------------
def _round_up(x, m):
    return (x + m - 1) // m * m


def _pow20(y):
    # y**20 via repeated squaring (matches integer_pow semantics).
    y2 = y * y
    y4 = y2 * y2
    y8 = y4 * y4
    y16 = y8 * y8
    return y16 * y4


# ----------------------------------------------------------------------------
# Pair (phi) kernel: 2-D tiled grid over the (P_pad, P_pad) broadcast matrix.
# grid = (P_pad//TM, P_pad//TN); row axis "parallel", column axis "arbitrary".
# pp rows per species: [1/r_e, -beta/r_e, -alpha/r_e, f_e*e^beta, A*e^alpha,
#                       B*e^beta, lamda, kappa]
# ----------------------------------------------------------------------------
def pair_kernel(m_ref, rrow_ref, rcol_ref, pp_ref, out_ref, acc_ref):
    i = pl.program_id(0)
    j = pl.program_id(1)
    nj = pl.num_programs(1)
    tm = rrow_ref.shape[0]
    tn = rcol_ref.shape[1]
    m = m_ref[0]                                  # number of valid (r<=5) pairs

    @pl.when(j == 0)
    def _init():
        acc_ref[...] = jnp.zeros_like(acc_ref)

    # Skip tiles that lie entirely in the invalid / padded region.
    active = jnp.logical_and(i * tm < m, j * tn < m)

    @pl.when(active)
    def _compute():
        r_row = rrow_ref[...]                     # (tm, 1)
        r_col = rcol_ref[...]                     # (1, tn)
        pp = pp_ref[...]                          # (16, tn)

        def prow(k):
            return pp[k:k + 1, :]                 # (1, tn)

        ire0, cb0, ca0, feb0, Aea0, Beb0, la0, ka0 = (prow(k) for k in range(8))
        ire1, cb1, ca1, feb1, Aea1, Beb1, la1, ka1 = (prow(k) for k in range(8, 16))

        # ---- species 0 (pair member 0 params, broadcast over rows of r) ----
        x0 = r_row * ire0                         # r / r_e        (tm, tn)
        eb0 = jnp.exp(r_row * cb0)                # e^{-beta r/r_e}
        ea0 = jnp.exp(r_row * ca0)                # e^{-alpha r/r_e}
        Dl0 = 1.0 + _pow20(x0 - la0)
        Dk0 = 1.0 + _pow20(x0 - ka0)
        R0 = pl.reciprocal(Dk0 * Dl0, approx=True)
        nf0 = feb0 * eb0                          # f_e e^{-beta(x-1)}
        fr0 = nf0 * (Dk0 * R0)                    # = nf0 / Dl0
        ph0 = (Aea0 * ea0 * Dl0 - Beb0 * eb0 * Dk0) * R0

        # ---- species 1 -----------------------------------------------------
        x1 = r_row * ire1
        eb1 = jnp.exp(r_row * cb1)
        ea1 = jnp.exp(r_row * ca1)
        Dl1 = 1.0 + _pow20(x1 - la1)
        Dk1 = 1.0 + _pow20(x1 - ka1)
        R1 = pl.reciprocal(Dk1 * Dl1, approx=True)
        nf1 = feb1 * eb1
        fr1 = nf1 * (Dk1 * R1)
        ph1 = (Aea1 * ea1 * Dl1 - Beb1 * eb1 * Dk1) * R1

        # phi01 = fr1/fr0*ph0 + fr0/fr1*ph1, with a single reciprocal of the
        # well-conditioned exp numerators (fr1/fr0 = fr1*nf1*Dl0/(nf0*nf1)).
        inv01 = pl.reciprocal(nf0 * nf1, approx=True)
        phi01 = inv01 * (fr1 * nf1 * Dl0 * ph0 + fr0 * nf0 * Dl1 * ph1)

        # torch.nonzero(r<=5) filtering == masking rows AND columns; select-
        # based masking keeps any Inf/NaN from masked regions out of the sum.
        mask2d = jnp.logical_and(r_row <= 5.0, r_col <= 5.0)
        phi01 = jnp.where(mask2d, phi01, 0.0)

        # Sublane-first reduction -> lane-dense (1, tn) partial.
        acc_ref[...] += jnp.sum(phi01, axis=0, keepdims=True)

    @pl.when(j == nj - 1)
    def _finalize():
        out_ref[0] = acc_ref[...]                 # (1, tn) row of (gi, 1, tn)


# ----------------------------------------------------------------------------
# Embedding (rho) kernel: 1-D grid over atom tiles (lane axis).
# rbp rows: [f_e*e^beta (Nb), -beta/r_e (Nb), 1/r_e (Nb), lamda (Nb)]
# fp rows:  [f_n0..f_n3, f_0..f_3, f_e, rho_n, 1/rho_n, 1/rho_e, rho_0,
#            1/rho_s, eta]
# ----------------------------------------------------------------------------
def embed_kernel(rb_ref, rbp_ref, fp_ref, msk_ref, out_ref):
    nb = rb_ref.shape[0]
    r_b = rb_ref[...]                             # (Nb, tn)
    rbp = rbp_ref[...]                            # (4*Nb, tn)
    feb_n = rbp[0:nb, :]
    cb_n = rbp[nb:2 * nb, :]
    ire_n = rbp[2 * nb:3 * nb, :]
    la_n = rbp[3 * nb:4 * nb, :]

    xb = r_b * ire_n
    frb = feb_n * jnp.exp(r_b * cb_n) \
        * pl.reciprocal(1.0 + _pow20(xb - la_n), approx=True)
    rho = jnp.sum(frb, axis=0, keepdims=True)     # (1, tn)

    fpv = fp_ref[...]                             # (15, tn)

    def frow(k):
        return fpv[k:k + 1, :]

    f_n0, f_n1, f_n2, f_n3 = frow(0), frow(1), frow(2), frow(3)
    f_0, f_1, f_2, f_3 = frow(4), frow(5), frow(6), frow(7)
    f_e_, rho_n, inv_rho_n, inv_rho_e, rho_0, inv_rho_s, eta = \
        (frow(k) for k in range(8, 15))

    t1 = rho * inv_rho_n - 1.0
    b1 = f_n0 + t1 * (f_n1 + t1 * (f_n2 + t1 * f_n3))
    t2 = rho * inv_rho_e - 1.0
    b2 = f_0 + t2 * (f_1 + t2 * (f_2 + t2 * f_3))
    logt = eta * jnp.log(rho * inv_rho_s)         # log((rho/rho_s)**eta)
    t3 = jnp.exp(logt)
    b3 = f_e_ * (1.0 - logt) * t3

    frho = jnp.where(rho < rho_n, b1, jnp.where(rho < rho_0, b2, b3))
    out_ref[...] = jnp.where(msk_ref[...] > 0.0, frho, 0.0)


# ----------------------------------------------------------------------------
# Wrapper (glue: gathers, sorting of the r<=5 prefix, padding, param packing)
# ----------------------------------------------------------------------------
def eam_energy(coords, params, pairs, nbrs):
    coords = jnp.asarray(coords, jnp.float32)
    params = jnp.asarray(params, jnp.float32)
    pairs = jnp.asarray(pairs, jnp.int32)
    nbrs = jnp.asarray(nbrs, jnp.int32)

    P = pairs.shape[0]
    N, Nb = nbrs.shape

    # ---------------- pair (phi) path ------------------------------------
    c0 = coords[pairs[:, 0]]
    c1 = coords[pairs[:, 1]]
    r_all = jnp.sqrt(jnp.sum((c1 - c0) ** 2, axis=1))            # (P,)

    # Sort valid (r<=5) pairs to a contiguous prefix; M goes to SMEM.
    keep = r_all <= 5.0
    order = jnp.argsort(jnp.where(keep, 0, 1))
    m = jnp.sum(keep).astype(jnp.int32)
    r_sorted = r_all[order]
    pairs_sorted = pairs[order]

    # Tile sizes: small at toy sizes; 256x512 at production (fits v7x VMEM).
    if P > 1024:
        TM, TN = 256, 512
    else:
        TM, TN = 128, 128
    P_pad = _round_up(max(P, 1), int(np.lcm(TM, TN)))
    pad = P_pad - P

    r_padded = jnp.concatenate(
        [r_sorted, jnp.full((pad,), 6.0, jnp.float32)])          # sentinel > 5
    i0 = jnp.concatenate([pairs_sorted[:, 0], jnp.zeros((pad,), jnp.int32)])
    i1 = jnp.concatenate([pairs_sorted[:, 1], jnp.zeros((pad,), jnp.int32)])
    p0 = params[i0]                                              # (P_pad, 22)
    p1 = params[i1]

    def species_rows(p):
        r_e, f_e = p[:, 0], p[:, 1]
        alpha, beta = p[:, 4], p[:, 5]
        A, B = p[:, 6], p[:, 7]
        kappa, lamda = p[:, 8], p[:, 9]
        return [1.0 / r_e,                 # 1/r_e      (for the pow20 terms)
                -beta / r_e,               # -beta/r_e  (exp argument)
                -alpha / r_e,              # -alpha/r_e
                f_e * jnp.exp(beta),       # f_e * e^beta
                A * jnp.exp(alpha),        # A * e^alpha
                B * jnp.exp(beta),         # B * e^beta
                lamda, kappa]

    pp = jnp.stack(species_rows(p0) + species_rows(p1), axis=0)  # (16, P_pad)
    r_row = r_padded[:, None]                                    # (P_pad, 1)
    r_col = r_padded[None, :]                                    # (1, P_pad)

    gi, gj = P_pad // TM, P_pad // TN
    pair_out = pl.pallas_call(
        pair_kernel,
        out_shape=jax.ShapeDtypeStruct((gi, 1, TN), jnp.float32),
        grid_spec=pltpu.PrefetchScalarGridSpec(
            num_scalar_prefetch=1,
            grid=(gi, gj),
            in_specs=[
                pl.BlockSpec((TM, 1), lambda i, j, m_ref: (i, 0)),
                pl.BlockSpec((1, TN), lambda i, j, m_ref: (0, j)),
                pl.BlockSpec((16, TN), lambda i, j, m_ref: (0, j)),
            ],
            out_specs=pl.BlockSpec((1, 1, TN), lambda i, j, m_ref: (i, 0, 0)),
            scratch_shapes=[pltpu.VMEM((1, TN), jnp.float32)],
        ),
        compiler_params=pltpu.CompilerParams(
            dimension_semantics=("parallel", "arbitrary"),
            vmem_limit_bytes=48 * 1024 * 1024),
    )(m.reshape(1), r_row, r_col, pp)
    p_e = 0.5 * jnp.sum(pair_out)

    # ---------------- embedding (rho) path --------------------------------
    rb = jnp.sqrt(jnp.sum((coords[nbrs] - coords[:, None, :]) ** 2, axis=-1))
    rb_r = rb.T                                                  # (Nb, N)

    nbr_p = params[nbrs]                                         # (N, Nb, 22)
    rbp = jnp.concatenate(
        [(nbr_p[:, :, 1] * jnp.exp(nbr_p[:, :, 5])).T,           # f_e*e^beta
         (-nbr_p[:, :, 5] / nbr_p[:, :, 0]).T,                   # -beta/r_e
         (1.0 / nbr_p[:, :, 0]).T,                               # 1/r_e
         nbr_p[:, :, 9].T],                                      # lamda
        axis=0)                                                  # (4*Nb, N)

    fp = jnp.stack(
        [params[:, 10], params[:, 11], params[:, 12], params[:, 13],
         params[:, 14], params[:, 15], params[:, 16], params[:, 17],
         params[:, 19],
         params[:, 20],
         1.0 / params[:, 20],
         1.0 / params[:, 2],
         params[:, 21],
         1.0 / params[:, 3],
         params[:, 18]],
        axis=0)                                                  # (15, N)

    N_pad = _round_up(N, 128)
    TE = 512 if N_pad % 512 == 0 else (256 if N_pad % 256 == 0 else 128)
    pad_n = N_pad - N
    rb_p = jnp.pad(rb_r, ((0, 0), (0, pad_n)), constant_values=6.0)
    rbp_p = jnp.pad(rbp, ((0, 0), (0, pad_n)), mode="edge")
    fp_p = jnp.pad(fp, ((0, 0), (0, pad_n)), mode="edge")
    mask_p = jnp.concatenate(
        [jnp.ones((1, N), jnp.float32), jnp.zeros((1, pad_n), jnp.float32)],
        axis=1)

    ge = N_pad // TE
    emb_out = pl.pallas_call(
        embed_kernel,
        out_shape=jax.ShapeDtypeStruct((1, N_pad), jnp.float32),
        grid=(ge,),
        in_specs=[
            pl.BlockSpec((Nb, TE), lambda j: (0, j)),
            pl.BlockSpec((4 * Nb, TE), lambda j: (0, j)),
            pl.BlockSpec((15, TE), lambda j: (0, j)),
            pl.BlockSpec((1, TE), lambda j: (0, j)),
        ],
        out_specs=pl.BlockSpec((1, TE), lambda j: (0, j)),
        compiler_params=pltpu.CompilerParams(
            dimension_semantics=("parallel",)),
    )(rb_p, rbp_p, fp_p, mask_p)
    rho_sum = jnp.sum(emb_out)

    return p_e + rho_sum


# ----------------------------------------------------------------------------
# Pure numpy reference replicating the PyTorch forward() semantics exactly
# (including its (M,1) vs (M,) broadcast and the Python-level f_rho branches).
# ----------------------------------------------------------------------------
def torch_like_reference(coords, params, pairs, nbrs):
    c = np.asarray(coords, dtype=np.float64)
    p = np.asarray(params, dtype=np.float64)

    c0 = c[pairs[:, 0]]
    c1 = c[pairs[:, 1]]
    r = np.linalg.norm(c1 - c0, axis=1)
    keep = np.nonzero(r <= 5.0)[0]
    r = r[keep][:, None]
    pi0 = p[pairs[keep, 0]]
    pi1 = p[pairs[keep, 1]]

    def f_r(rr, prm):
        f_e, beta, r_e, lam = prm[:, 0], prm[:, 1], prm[:, 2], prm[:, 3]
        x = rr / r_e
        return f_e * np.exp(-beta * (x - 1.0)) / (1.0 + (x - lam) ** 20)

    def phi_r(rr, prm):
        a, b, r_e, al, be, ka, la = (prm[:, i] for i in range(7))
        x = rr / r_e
        return (a * np.exp(-al * (x - 1.0)) / (1.0 + (x - ka) ** 20)
                - b * np.exp(-be * (x - 1.0)) / (1.0 + (x - la) ** 20))

    fr0 = f_r(r, pi0[:, [1, 5, 0, 9]])
    fr1 = f_r(r, pi1[:, [1, 5, 0, 9]])
    ph0 = phi_r(r, pi0[:, [6, 7, 0, 4, 5, 8, 9]])
    ph1 = phi_r(r, pi1[:, [6, 7, 0, 4, 5, 8, 9]])
    phi01 = fr1 / fr0 * ph0 + fr0 / fr1 * ph1
    p_e = 0.5 * np.sum(phi01)

    rho_sum = 0.0
    N = c.shape[0]
    for i in range(N):
        js = nbrs[i]
        rb = np.linalg.norm(c[js] - c[i], axis=1)
        prm = p[js][:, [1, 5, 0, 9]]
        f_e, beta, r_e, lam = prm[:, 0], prm[:, 1], prm[:, 2], prm[:, 3]
        x = rb / r_e
        rho_i = np.sum(f_e * np.exp(-beta * (x - 1.0)) / (1.0 + (x - lam) ** 20))
        q = p[i, [10, 11, 12, 13, 14, 15, 16, 17, 19, 20, 2, 21, 3, 18]]
        (f_n0, f_n1, f_n2, f_n3, f_0, f_1, f_2, f_3,
         f_e_, rho_n, rho_e, rho_0, rho_s, eta) = q
        if rho_i < rho_n:
            t = rho_i / rho_n - 1.0
            fr = f_n0 + f_n1 * t + f_n2 * t ** 2 + f_n3 * t ** 3
        elif rho_i < rho_0:
            t = rho_i / rho_e - 1.0
            fr = f_0 + f_1 * t + f_2 * t ** 2 + f_3 * t ** 3
        else:
            t = (rho_i / rho_s) ** eta
            fr = f_e_ * (1.0 - np.log(t)) * t
        rho_sum += fr
    return p_e + rho_sum


# ----------------------------------------------------------------------------
# Driver
# ----------------------------------------------------------------------------
if __name__ == "__main__":
    N = 8          # number of atoms
    D = 2          # 2D coordinates (2D_try)

    key = jax.random.PRNGKey(0)
    kc, kp = jax.random.split(key)
    coords = jax.random.uniform(kc, (N, D), dtype=jnp.float32,
                                minval=0.0, maxval=4.0)

    # columns: r_e f_e rho_e rho_s alpha beta A B kappa lamda
    #          f_n0 f_n1 f_n2 f_n3 f_0 f_1 f_2 f_3 eta f_e rho_n rho_0
    lo = jnp.array([2.0, 1.0, 20.0, 20.0, 7.0, 3.0, 0.3, 0.5, 0.3, 0.7,
                    -2.0, -2.0, -2.0, -2.0, -2.0, -2.0, -2.0, -2.0,
                    0.5, -3.0, 15.0, 30.0], dtype=jnp.float32)
    hi = jnp.array([3.0, 2.0, 30.0, 30.0, 9.0, 5.0, 0.5, 0.7, 0.5, 0.9,
                    2.0, 2.0, 2.0, 2.0, 2.0, 2.0, 2.0, 2.0,
                    1.0, -2.0, 20.0, 40.0], dtype=jnp.float32)
    u = jax.random.uniform(kp, (N, 22), dtype=jnp.float32)
    params = lo + u * (hi - lo)

    pairs_np = np.array(list(combinations(range(N), 2)), dtype=np.int32)
    nbrs_np = np.array([[j for j in range(N) if j != i] for i in range(N)],
                       dtype=np.int32)

    e_kernel = eam_energy(coords, params, pairs_np, nbrs_np)
    e_kernel = jax.block_until_ready(e_kernel)

    e_ref = torch_like_reference(np.asarray(coords), np.asarray(params),
                                 pairs_np, nbrs_np)

    rel_err = abs(float(e_kernel) - e_ref) / max(1.0, abs(e_ref))
    assert np.isfinite(float(e_kernel)), "kernel produced non-finite energy"
    assert rel_err < 1e-2, f"mismatch: kernel={float(e_kernel)} ref={e_ref}"

    print("KERNEL_OK")
</pallas_src>

<mosaic_0001>
module attributes {stable_mosaic.version = 11 : i64} {
  func.func @pair_kernel(%arg0: i32, %arg1: i32, %arg2: memref<1xi32, #tpu.memory_space<smem>>, %arg3: memref<128x1xf32, #tpu.memory_space<vmem>>, %arg4: memref<1x128xf32, #tpu.memory_space<vmem>>, %arg5: memref<16x128xf32, #tpu.memory_space<vmem>>, %arg6: memref<1x1x128xf32, #tpu.memory_space<vmem>>, %arg7: memref<1x128xf32, #tpu.memory_space<vmem>>) attributes {dimension_semantics = [#tpu.dimension_semantics<parallel>, #tpu.dimension_semantics<arbitrary>], iteration_bounds = array<i64: 1, 1>, scalar_prefetch = 1 : i64, scratch_operands = 1 : i64, tpu.core_type = #tpu.core_type<tc>, window_params = [{transform_indices = @transform_0, window_bounds = array<i64: 128, 1>}, {transform_indices = @transform_1, window_bounds = array<i64: 1, 128>}, {transform_indices = @transform_2, window_bounds = array<i64: 16, 128>}, {transform_indices = @transform_3, window_bounds = array<i64: 1, 1, 128>}]} {
    %c0 = arith.constant 0 : index
    %0 = memref.load %arg2[%c0] : memref<1xi32, #tpu.memory_space<smem>>
    %c0_i32 = arith.constant 0 : i32
    %1 = arith.cmpi eq, %arg1, %c0_i32 : i32
    %2 = arith.extui %1 : i1 to i32
    %c0_i32_0 = arith.constant 0 : i32
    %3 = arith.cmpi ne, %2, %c0_i32_0 : i32
    scf.if %3 {
      %cst = arith.constant 0.000000e+00 : f32
      %14 = vector.broadcast %cst : f32 to vector<1x128xf32>
      %c0_5 = arith.constant 0 : index
      %c0_6 = arith.constant 0 : index
      %15 = vector.load %arg7[%c0_5, %c0_6] : memref<1x128xf32, #tpu.memory_space<vmem>>, vector<1x128xf32>
      tpu.vector_store %arg7[%c0_5, %c0_6], %14 {strides = array<i32>} : memref<1x128xf32, #tpu.memory_space<vmem>>, vector<1x128xf32>,
    } else {
    }
    %c128_i32 = arith.constant 128 : i32
    %4 = arith.muli %arg0, %c128_i32 : i32
    %5 = arith.cmpi slt, %4, %0 : i32
    %c128_i32_1 = arith.constant 128 : i32
    %6 = arith.muli %arg1, %c128_i32_1 : i32
    %7 = arith.cmpi slt, %6, %0 : i32
    %8 = arith.andi %5, %7 : i1
    %9 = arith.extui %8 : i1 to i32
    %c0_i32_2 = arith.constant 0 : i32
    %10 = arith.cmpi ne, %9, %c0_i32_2 : i32
    scf.if %10 {
      %c0_5 = arith.constant 0 : index
      %c0_6 = arith.constant 0 : index
      %14 = vector.load %arg3[%c0_5, %c0_6] : memref<128x1xf32, #tpu.memory_space<vmem>>, vector<128x1xf32>
      %c0_7 = arith.constant 0 : index
      %c0_8 = arith.constant 0 : index
      %15 = vector.load %arg4[%c0_7, %c0_8] : memref<1x128xf32, #tpu.memory_space<vmem>>, vector<1x128xf32>
      %c0_9 = arith.constant 0 : index
      %c0_10 = arith.constant 0 : index
      %16 = vector.load %arg5[%c0_9, %c0_10] : memref<16x128xf32, #tpu.memory_space<vmem>>, vector<16x128xf32>
      %17 = vector.extract_strided_slice %16 {offsets = [0, 0], sizes = [1, 128], strides = [1, 1]} : vector<16x128xf32> to vector<1x128xf32>
      %18 = vector.extract_strided_slice %16 {offsets = [1, 0], sizes = [1, 128], strides = [1, 1]} : vector<16x128xf32> to vector<1x128xf32>
      %19 = vector.extract_strided_slice %16 {offsets = [2, 0], sizes = [1, 128], strides = [1, 1]} : vector<16x128xf32> to vector<1x128xf32>
      %20 = vector.extract_strided_slice %16 {offsets = [3, 0], sizes = [1, 128], strides = [1, 1]} : vector<16x128xf32> to vector<1x128xf32>
      %21 = vector.extract_strided_slice %16 {offsets = [4, 0], sizes = [1, 128], strides = [1, 1]} : vector<16x128xf32> to vector<1x128xf32>
      %22 = vector.extract_strided_slice %16 {offsets = [5, 0], sizes = [1, 128], strides = [1, 1]} : vector<16x128xf32> to vector<1x128xf32>
      %23 = vector.extract_strided_slice %16 {offsets = [6, 0], sizes = [1, 128], strides = [1, 1]} : vector<16x128xf32> to vector<1x128xf32>
      %24 = vector.extract_strided_slice %16 {offsets = [7, 0], sizes = [1, 128], strides = [1, 1]} : vector<16x128xf32> to vector<1x128xf32>
      %25 = vector.extract_strided_slice %16 {offsets = [8, 0], sizes = [1, 128], strides = [1, 1]} : vector<16x128xf32> to vector<1x128xf32>
      %26 = vector.extract_strided_slice %16 {offsets = [9, 0], sizes = [1, 128], strides = [1, 1]} : vector<16x128xf32> to vector<1x128xf32>
      %27 = vector.extract_strided_slice %16 {offsets = [10, 0], sizes = [1, 128], strides = [1, 1]} : vector<16x128xf32> to vector<1x128xf32>
      %28 = vector.extract_strided_slice %16 {offsets = [11, 0], sizes = [1, 128], strides = [1, 1]} : vector<16x128xf32> to vector<1x128xf32>
      %29 = vector.extract_strided_slice %16 {offsets = [12, 0], sizes = [1, 128], strides = [1, 1]} : vector<16x128xf32> to vector<1x128xf32>
      %30 = vector.extract_strided_slice %16 {offsets = [13, 0], sizes = [1, 128], strides = [1, 1]} : vector<16x128xf32> to vector<1x128xf32>
      %31 = vector.extract_strided_slice %16 {offsets = [14, 0], sizes = [1, 128], strides = [1, 1]} : vector<16x128xf32> to vector<1x128xf32>
      %32 = vector.extract_strided_slice %16 {offsets = [15, 0], sizes = [1, 128], strides = [1, 1]} : vector<16x128xf32> to vector<1x128xf32>
      %33 = vector.broadcast %14 : vector<128x1xf32> to vector<128x128xf32>
      %34 = vector.broadcast %17 : vector<1x128xf32> to vector<128x128xf32>
      %35 = arith.mulf %33, %34 : vector<128x128xf32>
      %36 = vector.broadcast %14 : vector<128x1xf32> to vector<128x128xf32>
      %37 = vector.broadcast %18 : vector<1x128xf32> to vector<128x128xf32>
      %38 = arith.mulf %36, %37 : vector<128x128xf32>
      %39 = math.exp %38 : vector<128x128xf32>
      %40 = vector.broadcast %14 : vector<128x1xf32> to vector<128x128xf32>
      %41 = vector.broadcast %19 : vector<1x128xf32> to vector<128x128xf32>
      %42 = arith.mulf %40, %41 : vector<128x128xf32>
      %43 = math.exp %42 : vector<128x128xf32>
      %44 = vector.broadcast %23 : vector<1x128xf32> to vector<128x128xf32>
      %45 = arith.subf %35, %44 : vector<128x128xf32>
      %46 = arith.mulf %45, %45 : vector<128x128xf32>
      %47 = arith.mulf %46, %46 : vector<128x128xf32>
      %48 = arith.mulf %47, %47 : vector<128x128xf32>
      %49 = arith.mulf %48, %48 : vector<128x128xf32>
      %50 = arith.mulf %49, %47 : vector<128x128xf32>
      %cst = arith.constant 1.000000e+00 : f32
      %51 = vector.broadcast %cst : f32 to vector<128x128xf32>
      %52 = arith.addf %51, %50 : vector<128x128xf32>
      %53 = vector.broadcast %24 : vector<1x128xf32> to vector<128x128xf32>
      %54 = arith.subf %35, %53 : vector<128x128xf32>
      %55 = arith.mulf %54, %54 : vector<128x128xf32>
      %56 = arith.mulf %55, %55 : vector<128x128xf32>
      %57 = arith.mulf %56, %56 : vector<128x128xf32>
      %58 = arith.mulf %57, %57 : vector<128x128xf32>
      %59 = arith.mulf %58, %56 : vector<128x128xf32>
      %cst_11 = arith.constant 1.000000e+00 : f32
      %60 = vector.broadcast %cst_11 : f32 to vector<128x128xf32>
      %61 = arith.addf %60, %59 : vector<128x128xf32>
      %62 = arith.mulf %61, %52 : vector<128x128xf32>
      %63 = tpu.reciprocal %62 {approx = true} : vector<128x128xf32> -> vector<128x128xf32>
      %64 = vector.broadcast %20 : vector<1x128xf32> to vector<128x128xf32>
      %65 = arith.mulf %64, %39 : vector<128x128xf32>
      %66 = arith.mulf %61, %63 : vector<128x128xf32>
      %67 = arith.mulf %65, %66 : vector<128x128xf32>
      %68 = vector.broadcast %21 : vector<1x128xf32> to vector<128x128xf32>
      %69 = arith.mulf %68, %43 : vector<128x128xf32>
      %70 = arith.mulf %69, %52 : vector<128x128xf32>
      %71 = vector.broadcast %22 : vector<1x128xf32> to vector<128x128xf32>
      %72 = arith.mulf %71, %39 : vector<128x128xf32>
      %73 = arith.mulf %72, %61 : vector<128x128xf32>
      %74 = arith.subf %70, %73 : vector<128x128xf32>
      %75 = arith.mulf %74, %63 : vector<128x128xf32>
      %76 = vector.broadcast %14 : vector<128x1xf32> to vector<128x128xf32>
      %77 = vector.broadcast %25 : vector<1x128xf32> to vector<128x128xf32>
      %78 = arith.mulf %76, %77 : vector<128x128xf32>
      %79 = vector.broadcast %14 : vector<128x1xf32> to vector<128x128xf32>
      %80 = vector.broadcast %26 : vector<1x128xf32> to vector<128x128xf32>
      %81 = arith.mulf %79, %80 : vector<128x128xf32>
      %82 = math.exp %81 : vector<128x128xf32>
      %83 = vector.broadcast %14 : vector<128x1xf32> to vector<128x128xf32>
      %84 = vector.broadcast %27 : vector<1x128xf32> to vector<128x128xf32>
      %85 = arith.mulf %83, %84 : vector<128x128xf32>
      %86 = math.exp %85 : vector<128x128xf32>
      %87 = vector.broadcast %31 : vector<1x128xf32> to vector<128x128xf32>
      %88 = arith.subf %78, %87 : vector<128x128xf32>
      %89 = arith.mulf %88, %88 : vector<128x128xf32>
      %90 = arith.mulf %89, %89 : vector<128x128xf32>
      %91 = arith.mulf %90, %90 : vector<128x128xf32>
      %92 = arith.mulf %91, %91 : vector<128x128xf32>
      %93 = arith.mulf %92, %90 : vector<128x128xf32>
      %cst_12 = arith.constant 1.000000e+00 : f32
      %94 = vector.broadcast %cst_12 : f32 to vector<128x128xf32>
      %95 = arith.addf %94, %93 : vector<128x128xf32>
      %96 = vector.broadcast %32 : vector<1x128xf32> to vector<128x128xf32>
      %97 = arith.subf %78, %96 : vector<128x128xf32>
      %98 = arith.mulf %97, %97 : vector<128x128xf32>
      %99 = arith.mulf %98, %98 : vector<128x128xf32>
      %100 = arith.mulf %99, %99 : vector<128x128xf32>
      %101 = arith.mulf %100, %100 : vector<128x128xf32>
      %102 = arith.mulf %101, %99 : vector<128x128xf32>
      %cst_13 = arith.constant 1.000000e+00 : f32
      %103 = vector.broadcast %cst_13 : f32 to vector<128x128xf32>
      %104 = arith.addf %103, %102 : vector<128x128xf32>
      %105 = arith.mulf %104, %95 : vector<128x128xf32>
      %106 = tpu.reciprocal %105 {approx = true} : vector<128x128xf32> -> vector<128x128xf32>
      %107 = vector.broadcast %28 : vector<1x128xf32> to vector<128x128xf32>
      %108 = arith.mulf %107, %82 : vector<128x128xf32>
      %109 = arith.mulf %104, %106 : vector<128x128xf32>
      %110 = arith.mulf %108, %109 : vector<128x128xf32>
      %111 = vector.broadcast %29 : vector<1x128xf32> to vector<128x128xf32>
      %112 = arith.mulf %111, %86 : vector<128x128xf32>
      %113 = arith.mulf %112, %95 : vector<128x128xf32>
      %114 = vector.broadcast %30 : vector<1x128xf32> to vector<128x128xf32>
      %115 = arith.mulf %114, %82 : vector<128x128xf32>
      %116 = arith.mulf %115, %104 : vector<128x128xf32>
      %117 = arith.subf %113, %116 : vector<128x128xf32>
      %118 = arith.mulf %117, %106 : vector<128x128xf32>
      %119 = arith.mulf %65, %108 : vector<128x128xf32>
      %120 = tpu.reciprocal %119 {approx = true} : vector<128x128xf32> -> vector<128x128xf32>
      %121 = arith.mulf %110, %108 : vector<128x128xf32>
      %122 = arith.mulf %121, %52 : vector<128x128xf32>
      %123 = arith.mulf %122, %75 : vector<128x128xf32>
      %124 = arith.mulf %67, %65 : vector<128x128xf32>
      %125 = arith.mulf %124, %95 : vector<128x128xf32>
      %126 = arith.mulf %125, %118 : vector<128x128xf32>
      %127 = arith.addf %123, %126 : vector<128x128xf32>
      %128 = arith.mulf %120, %127 : vector<128x128xf32>
      %cst_14 = arith.constant 5.000000e+00 : f32
      %129 = vector.broadcast %cst_14 : f32 to vector<128x1xf32>
      %130 = arith.cmpf ole, %14, %129 : vector<128x1xf32>
      %cst_15 = arith.constant 5.000000e+00 : f32
      %131 = vector.broadcast %cst_15 : f32 to vector<1x128xf32>
      %132 = arith.cmpf ole, %15, %131 : vector<1x128xf32>
      %133 = vector.broadcast %130 : vector<128x1xi1> to vector<128x128xi1>
      %134 = vector.broadcast %132 : vector<1x128xi1> to vector<128x128xi1>
      %135 = arith.andi %133, %134 : vector<128x128xi1>
      %cst_16 = arith.constant 0.000000e+00 : f32
      %136 = vector.broadcast %cst_16 : f32 to vector<128x128xf32>
      %137 = arith.select %135, %128, %136 : vector<128x128xi1>, vector<128x128xf32>
      %c0_17 = arith.constant 0 : index
      %c0_18 = arith.constant 0 : index
      %138 = vector.load %arg7[%c0_17, %c0_18] : memref<1x128xf32, #tpu.memory_space<vmem>>, vector<1x128xf32>
      %cst_19 = arith.constant dense<0.000000e+00> : vector<128xf32>
      %139 = vector.multi_reduction <add>, %137, %cst_19 [0] : vector<128x128xf32> to vector<128xf32>
      %140 = vector.shape_cast %139 : vector<128xf32> to vector<1x128xf32>
      %141 = arith.addf %138, %140 : vector<1x128xf32>
      %c0_20 = arith.constant 0 : index
      %c0_21 = arith.constant 0 : index
      %142 = vector.load %arg7[%c0_20, %c0_21] : memref<1x128xf32, #tpu.memory_space<vmem>>, vector<1x128xf32>
      tpu.vector_store %arg7[%c0_20, %c0_21], %141 {strides = array<i32>} : memref<1x128xf32, #tpu.memory_space<vmem>>, vector<1x128xf32>,
    } else {
    }
    %c0_i32_3 = arith.constant 0 : i32
    %11 = arith.cmpi eq, %arg1, %c0_i32_3 : i32
    %12 = arith.extui %11 : i1 to i32
    %c0_i32_4 = arith.constant 0 : i32
    %13 = arith.cmpi ne, %12, %c0_i32_4 : i32
    scf.if %13 {
      %c0_5 = arith.constant 0 : index
      %c0_6 = arith.constant 0 : index
      %14 = vector.load %arg7[%c0_5, %c0_6] : memref<1x128xf32, #tpu.memory_space<vmem>>, vector<1x128xf32>
      %c0_7 = arith.constant 0 : index
      %c0_8 = arith.constant 0 : index
      %c0_9 = arith.constant 0 : index
      %15 = vector.load %arg6[%c0_7, %c0_8, %c0_9] : memref<1x1x128xf32, #tpu.memory_space<vmem>>, vector<1x1x128xf32>
      %16 = vector.shape_cast %15 : vector<1x1x128xf32> to vector<1x128xf32>
      %17 = vector.shape_cast %14 : vector<1x128xf32> to vector<1x1x128xf32>
      tpu.vector_store %arg6[%c0_7, %c0_8, %c0_9], %17 {strides = array<i32>} : memref<1x1x128xf32, #tpu.memory_space<vmem>>, vector<1x1x128xf32>,
    } else {
    }
    return
  }
  func.func @transform_0(%arg0: i32, %arg1: i32, %arg2: memref<1xi32, #tpu.memory_space<smem>>) -> (i32, i32) {
    %c0_i32 = arith.constant 0 : i32
    %c0_i32_0 = arith.constant 0 : i32
    return %arg0, %c0_i32 : i32, i32
  }
  func.func @transform_1(%arg0: i32, %arg1: i32, %arg2: memref<1xi32, #tpu.memory_space<smem>>) -> (i32, i32) {
    %c0_i32 = arith.constant 0 : i32
    %c0_i32_0 = arith.constant 0 : i32
    return %c0_i32, %arg1 : i32, i32
  }
  func.func @transform_2(%arg0: i32, %arg1: i32, %arg2: memref<1xi32, #tpu.memory_space<smem>>) -> (i32, i32) {
    %c0_i32 = arith.constant 0 : i32
    %c0_i32_0 = arith.constant 0 : i32
    return %c0_i32, %arg1 : i32, i32
  }
  func.func @transform_3(%arg0: i32, %arg1: i32, %arg2: memref<1xi32, #tpu.memory_space<smem>>) -> (i32, i32, i32) {
    %c0_i32 = arith.constant 0 : i32
    %c0_i32_0 = arith.constant 0 : i32
    %c0_i32_1 = arith.constant 0 : i32
    return %arg0, %c0_i32, %c0_i32_0 : i32, i32, i32
  }
}

</mosaic_0001>

<bundles_post_ra>
// kernel: tpu_custom_call.1
= control target key start
LH: loop header
LB: loop body
LE: loop exit
PB: predicated region body
PF: predicated region fallthrough
CT: control target
= control target key end

     0   :  { %10 = vsyncpa [#allocation6], 0  ;;  %v1811_v0 = vmov 0.0   ;;  %s3618_s0 = inlined_call_operand.<no memory space> [shape: s32[1], index: 0, kind: input, shape index: {}]   ;;  %s3619_s1 = inlined_call_operand.vmem [shape: f32[128,1], index: 1, kind: input, shape index: {}]   ;;  %s3620_s2 = inlined_call_operand.vmem [shape: f32[1,128], index: 2, kind: input, shape index: {}]   ;;  %s3621_s3 = inlined_call_operand.vmem [shape: f32[16,128], index: 3, kind: input, shape index: {}]   ;;  %s3622_s4 = inlined_call_operand.hbm [shape: f32[1,1,128], index: 4, kind: output, shape index: {}]  }
   0x1   :  { %p1556_p0 = scmp.gt.s32.totalorder %s3618_s0, 0  ;;  %22 = vst [vmem:[#allocation2] sm:$0x1] %v1811_v0 }
   0x3   :  { %p27_p1 = pnand %p1556_p0, %p1556_p0 }
   0x5   :  { %30 = sbr.rel (%p27_p1) target bundleno = 472 (0x1d8), region = 21 }
   0xa   :  { %v33_v1 = vld [vmem:[%s3619_s1 + $0x10] sm:$0xff]  ;;  %v31_v2 = vld [vmem:[%s3619_s1] sm:$0xff]  ;;  %v3623_v3 = vmov 0   ;;  %v34_v4 = vld [vmem:[%s3619_s1 + $0x18] sm:$0xff]  ;;  %v130_v34 = vlaneseq }
   0xb   :  { %1562 = vset.pattern.permute.xlu1 %v3623_v3  ;;  %1561 = vset.pattern.permute.xlu0 %v3623_v3  ;;  %v32_v5 = vld [vmem:[%s3619_s1 + $0x8] sm:$0xff]  ;;  %v35_v7 = vld [vmem:[%s3619_s1 + $0x20] sm:$0xff]  ;;  %v38_v8 = vld [vmem:[%s3619_s1 + $0x38] sm:$0xff]  ;;  %vm1378_vm0 = vcmp.le.f32.partialorder %v31_v2, 5.0  ;;  %vm1380_vm2 = vcmp.le.f32.partialorder %v33_v1, 5.0  ;;  %vm1381_vm3 = vcmp.le.f32.partialorder %v34_v4, 5.0 }
   0xc   :  { %62 = vperm.xlu1 %1562, %v33_v1   ;;  %52 = vperm.xlu0 %1561, %v31_v2   ;;  %v36_v6 = vld [vmem:[%s3619_s1 + $0x28] sm:$0xff]  ;;  %v37_v9 = vld [vmem:[%s3619_s1 + $0x30] sm:$0xff]  ;;  %v39_v11 = vld [vmem:[%s3619_s1 + $0x40] sm:$0xff]  ;;  %vm1379_vm1 = vcmp.le.f32.partialorder %v32_v5, 5.0  ;;  %v1395_v19 = vsel %vm1378_vm0, 1, %v3623_v3  ;;  %v1398_v20 = vsel %vm1381_vm3, 1, %v3623_v3 }
   0xd   :  { %v40_v10 = vld [vmem:[%s3619_s1 + $0x48] sm:$0xff]  ;;  %v42_v12 = vld [vmem:[%s3619_s1 + $0x58] sm:$0xff]  ;;  %v41_v13 = vld [vmem:[%s3619_s1 + $0x50] sm:$0xff]  ;;  %v1396_v18 = vsel %vm1379_vm1, 1, %v3623_v3  ;;  %v1397_v21 = vsel %vm1380_vm2, 1, %v3623_v3  ;;  %vm1383_vm4 = vcmp.le.f32.partialorder %v36_v6, 5.0 }
   0xe   :  { %v44_v14 = vld [vmem:[%s3619_s1 + $0x68] sm:$0xff]  ;;  %v43_v15 = vld [vmem:[%s3619_s1 + $0x60] sm:$0xff]  ;;  %v46_v16 = vld [vmem:[%s3619_s1 + $0x78] sm:$0xff]  ;;  %vm1382_vm5 = vcmp.le.f32.partialorder %v35_v7, 5.0  ;;  %v1400_v22 = vsel %vm1383_vm4, 1, %v3623_v3  ;;  %vm1385_vm6 = vcmp.le.f32.partialorder %v38_v8, 5.0 }
   0xf   :  { %v45_v17 = vld [vmem:[%s3619_s1 + $0x70] sm:$0xff]  ;;  %v1399_v23 = vsel %vm1382_vm5, 1, %v3623_v3  ;;  %vm1384_vm7 = vcmp.le.f32.partialorder %v37_v9, 5.0  ;;  %v1402_v24 = vsel %vm1385_vm6, 1, %v3623_v3  ;;  %vm1387_vm8 = vcmp.le.f32.partialorder %v40_v10, 5.0  ;;  %v48_v37 = vld [vmem:[%s3621_s3] sm:$0xff] }
  0x10   :  { %67 = vperm.xlu1 %1562, %v34_v4   ;;  %57 = vperm.xlu0 %1561, %v32_v5   ;;  %v1401_v25 = vsel %vm1384_vm7, 1, %v3623_v3  ;;  %vm1386_vm9 = vcmp.le.f32.partialorder %v39_v11, 5.0  ;;  %v1404_v26 = vsel %vm1387_vm8, 1, %v3623_v3  ;;  %vm1389_vm10 = vcmp.le.f32.partialorder %v42_v12, 5.0  ;;  %v49_v38 = vld [vmem:[%s3621_s3 + $0x8] sm:$0xff] }
  0x11   :  { %v1403_v27 = vsel %vm1386_vm9, 1, %v3623_v3  ;;  %vm1388_vm11 = vcmp.le.f32.partialorder %v41_v13, 5.0  ;;  %v1406_v28 = vsel %vm1389_vm10, 1, %v3623_v3  ;;  %vm1391_vm12 = vcmp.le.f32.partialorder %v44_v14, 5.0 }
  0x12   :  { %v1405_v29 = vsel %vm1388_vm11, 1, %v3623_v3  ;;  %vm1390_vm13 = vcmp.le.f32.partialorder %v43_v15, 5.0  ;;  %v1408_v30 = vsel %vm1391_vm12, 1, %v3623_v3  ;;  %vm1393_vm14 = vcmp.le.f32.partialorder %v46_v16, 5.0 }
  0x13   :  { %v1407_v31 = vsel %vm1390_vm13, 1, %v3623_v3  ;;  %vm1392_vm15 = vcmp.le.f32.partialorder %v45_v17, 5.0  ;;  %v1410_v32 = vsel %vm1393_vm14, 1, %v3623_v3  ;;  %v1908_v35 = vshrl.u32 %v130_v34, 7 }
  0x14   :  { %77 = vperm.xlu1 %1562, %v36_v6   ;;  %72 = vperm.xlu0 %1561, %v35_v7   ;;  %v1409_v33 = vsel %vm1392_vm15, 1, %v3623_v3 }
  0x15   :  { %v1911_v36 = vsub.s32 0, %v1908_v35  ;;  %v372_v40 = vsub.s32 7, %v1908_v35  ;;  %v152_v45 = vsub.s32 1, %v1908_v35  ;;  %v256_v46 = vsub.s32 6, %v1908_v35 }
  0x16   :  { %v204_v47 = vsub.s32 2, %v1908_v35 }
  0x17   :  { %3709 = vst [vmem:[#allocation8_spill] sm:$0xff] %v1911_v36  ;;  %v1920_v39 = vrot.slane %v48_v37, %v1911_v36  ;;  %v1924_v42 = vrot.slane %v49_v38, %v1911_v36  ;;  %v1926_v43 = vrot.slane %v48_v37, %v372_v40  ;;  %v1932_v48 = vrot.slane %v49_v38, %v372_v40 }
  0x18   :  { %87 = vperm.xlu1 %1562, %v38_v8   ;;  %82 = vperm.xlu0 %1561, %v37_v9   ;;  %v1936_v52 = vrot.slane %v48_v37, %v152_v45  ;;  %v1938_v53 = vrot.slane %v48_v37, %v256_v46  ;;  %v1940_v54 = vrot.slane %v48_v37, %v204_v47 }
  0x19   :  { %v1942_v55 = vrot.slane %v49_v38, %v256_v46  ;;  %v1946_v59 = vrot.slane %v49_v38, %v152_v45  ;;  %v1948_v60 = vrot.slane %v49_v38, %v204_v47 }
  0x1c   :  { %97 = vperm.xlu1 %1562, %v40_v10   ;;  %92 = vperm.xlu0 %1561, %v39_v11  }
  0x20   :  { %107 = vperm.xlu1 %1562, %v42_v12   ;;  %102 = vperm.xlu0 %1561, %v41_v13  }
  0x24   :  { %117 = vperm.xlu1 %1562, %v44_v14   ;;  %112 = vperm.xlu0 %1561, %v43_v15  }
  0x28   :  { %127 = vperm.xlu1 %1562, %v46_v16   ;;  %122 = vperm.xlu0 %1561, %v45_v17  }
  0x2c   :  { %1415 = vperm.xlu1 %1562, %v1396_v18   ;;  %1412 = vperm.xlu0 %1561, %v1395_v19  }
  0x30   :  { %1421 = vperm.xlu1 %1562, %v1398_v20   ;;  %1418 = vperm.xlu0 %1561, %v1397_v21  }
  0x34   :  { %1427 = vperm.xlu1 %1562, %v1400_v22   ;;  %1424 = vperm.xlu0 %1561, %v1399_v23  }
  0x38   :  { %1433 = vperm.xlu1 %1562, %v1402_v24   ;;  %1430 = vperm.xlu0 %1561, %v1401_v25  }
  0x3c   :  { %1439 = vperm.xlu1 %1562, %v1404_v26   ;;  %1436 = vperm.xlu0 %1561, %v1403_v27  }
  0x40   :  { %1445 = vperm.xlu1 %1562, %v1406_v28   ;;  %1442 = vperm.xlu0 %1561, %v1405_v29  }
  0x44   :  { %1451 = vperm.xlu1 %1562, %v1408_v30   ;;  %1448 = vperm.xlu0 %1561, %v1407_v31  }
  0x48   :  { %1457 = vperm.xlu1 %1562, %v1410_v32   ;;  %1454 = vperm.xlu0 %1561, %v1409_v33  }
  0x87   :  { %v63_v41 = vpop.permute.xlu1 %62  ;;  %v53_v51 = vpop.permute.xlu0 %52 }
  0x88   :  { %v136_v44 = vmul.f32 %v1920_v39, %v63_v41  ;;  %v680_v49 = vmul.f32 %v1924_v42, %v63_v41  ;;  %v134_v58 = vmul.f32 %v1920_v39, %v53_v51  ;;  %v156_v61 = vmul.f32 %v1936_v52, %v63_v41 }
  0x89   :  { %v208_v63 = vmul.f32 %v1940_v54, %v63_v41  ;;  %v700_v5 = vmul.f32 %v1946_v59, %v63_v41  ;;  %v678_v7 = vmul.f32 %v1924_v42, %v53_v51  ;;  %v752_v10 = vmul.f32 %v1948_v60, %v63_v41 }
  0x8a   :  { %v376_v50 = vsub.f32 %v136_v44, %v1926_v43  ;;  %v920_v56 = vsub.f32 %v680_v49, %v1932_v48  ;;  %v260_v62 = vsub.f32 %v136_v44, %v1938_v53  ;;  %v804_v0 = vsub.f32 %v680_v49, %v1942_v55 }
  0x8b   :  { %v374_v4 = vsub.f32 %v134_v58, %v1926_v43  ;;  %v258_v6 = vsub.f32 %v134_v58, %v1938_v53  ;;  %v174_v8 = vmul.f32 1.442695, %v156_v61  ;;  %v1959_v11 = vpop.permute.xlu1 %67  ;;  %v226_v12 = vmul.f32 1.442695, %v208_v63 }
  0x8c   :  { %v392_v57 = vmul.f32 %v376_v50, %v376_v50  ;;  %v936_v1 = vmul.f32 %v920_v56, %v920_v56  ;;  %v276_v9 = vmul.f32 %v260_v62, %v260_v62  ;;  %v820_v13 = vmul.f32 %v804_v0, %v804_v0  ;;  %v1982_v50 = vpop.permute.xlu0 %57 }
  0x8d   :  { %v154_v15 = vmul.f32 %v1936_v52, %v53_v51  ;;  %v206_v17 = vmul.f32 %v1940_v54, %v53_v51  ;;  %v390_v18 = vmul.f32 %v374_v4, %v374_v4  ;;  %v718_v19 = vmul.f32 1.442695, %v700_v5 }
  0x8e   :  { %v408_v2 = vmul.f32 %v392_v57, %v392_v57  ;;  %v952_v14 = vmul.f32 %v936_v1, %v936_v1  ;;  %v274_v20 = vmul.f32 %v258_v6, %v258_v6  ;;  %v918_v21 = vsub.f32 %v678_v7, %v1932_v48 }
  0x8f   :  { %v137_v22 = vmul.f32 %v1920_v39, %v1959_v11  ;;  %1563 = vpow2.f32 %v174_v8  ;;  %v1966_v23 = vmul.f32 %v276_v9, %v276_v9  ;;  %v770_v24 = vmul.f32 1.442695, %v752_v10 }
  0x90   :  { %v424_v16 = vmul.f32 %v408_v2, %v408_v2  ;;  %1565 = vpow2.f32 %v226_v12  ;;  %v1968_v25 = vmul.f32 %v820_v13, %v820_v13  ;;  %v968_v26 = vmul.f32 %v952_v14, %v952_v14 }
  0x91   :  { %v170_v27 = vmul.f32 1.442695, %v154_v15  ;;  %v222_v29 = vmul.f32 1.442695, %v206_v17  ;;  %v406_v30 = vmul.f32 %v390_v18, %v390_v18  ;;  %v802_v31 = vsub.f32 %v678_v7, %v1942_v55 }
  0x92   :  { %v440_v28 = vmul.f32 %v424_v16, %v424_v16  ;;  %1567 = vpow2.f32 %v718_v19  ;;  %v1971_v32 = vmul.f32 %v274_v20, %v274_v20  ;;  %v934_v33 = vmul.f32 %v918_v21, %v918_v21 }
  0x93   :  { %v377_v34 = vsub.f32 %v137_v22, %v1926_v43  ;;  %v308_v37 = vmul.f32 %v1966_v23, %v1966_v23  ;;  %1569 = vpow2.f32 %v770_v24  ;;  %v698_v38 = vmul.f32 %v1946_v59, %v53_v51 }
  0x94   :  { %v681_v40 = vmul.f32 %v1924_v42, %v1959_v11  ;;  %v852_v41 = vmul.f32 %v1968_v25, %v1968_v25  ;;  %v984_v44 = vmul.f32 %v968_v26, %v968_v26  ;;  %1571 = vpow2.f32 %v170_v27 }
  0x95   :  { %v750_v45 = vmul.f32 %v1948_v60, %v53_v51  ;;  %v456_v46 = vmul.f32 %v440_v28, %v408_v2  ;;  %1573 = vpow2.f32 %v222_v29  ;;  %v422_v47 = vmul.f32 %v406_v30, %v406_v30  ;;  %v2018_v29 = vpop.permute.xlu1 %77 }
  0x96   :  { %v818_v49 = vmul.f32 %v802_v31, %v802_v31  ;;  %v306_v56 = vmul.f32 %v1971_v32, %v1971_v32  ;;  %v950_v57 = vmul.f32 %v934_v33, %v934_v33  ;;  %v261_v58 = vsub.f32 %v137_v22, %v1938_v53 }
  0x97   :  { %v393_v61 = vmul.f32 %v377_v34, %v377_v34  ;;  %v1987_v62 = vmul.f32 %v308_v37, %v308_v37  ;;  %v714_v63 = vmul.f32 1.442695, %v698_v38  ;;  %v157_v0 = vmul.f32 %v1936_v52, %v1959_v11 }
  0x98   :  { %v921_v51 = vsub.f32 %v681_v40, %v1932_v48  ;;  %v1992_v1 = vmul.f32 %v852_v41, %v852_v41  ;;  %v1000_v2 = vmul.f32 %v984_v44, %v952_v14  ;;  %v766_v4 = vmul.f32 1.442695, %v750_v45 }
  0x99   :  { %v135_v5 = vmul.f32 %v1920_v39, %v1982_v50  ;;  %v1996_v6 = vadd.f32 1.0, %v456_v46  ;;  %v438_v7 = vmul.f32 %v422_v47, %v422_v47  ;;  %v1998_v8 = vmul.f32 %v818_v49, %v818_v49 }
  0x9a   :  { %v209_v9 = vmul.f32 %v1940_v54, %v1959_v11  ;;  %v2002_v10 = vmul.f32 %v306_v56, %v306_v56  ;;  %v966_v12 = vmul.f32 %v950_v57, %v950_v57  ;;  %v277_v13 = vmul.f32 %v261_v58, %v261_v58 }
  0x9b   :  { %3710 = vst [vmem:[#allocation9_spill] sm:$0xff] %v1996_v6  ;;  %v409_v15 = vmul.f32 %v393_v61, %v393_v61  ;;  %1575 = vpow2.f32 %v714_v63  ;;  %v176_v16 = vmul.f32 1.442695, %v157_v0  ;;  %v805_v14 = vsub.f32 %v681_v40, %v1942_v55 }
  0x9c   :  { %v937_v17 = vmul.f32 %v921_v51, %v921_v51  ;;  %v2005_v18 = vpop.eup %1563  ;;  %v2007_v19 = vadd.f32 1.0, %v1000_v2  ;;  %1577 = vpow2.f32 %v766_v4  ;;  %v701_v20 = vmul.f32 %v1946_v59, %v1959_v11 }
  0x9d   :  { %3711 = vst [vmem:[#allocation10_spill] sm:$0xff] %v2005_v18  ;;  %v375_v21 = vsub.f32 %v135_v5, %v1926_v43  ;;  %v2012_v22 = vpop.eup %1565  ;;  %v454_v24 = vmul.f32 %v438_v7, %v406_v30  ;;  %v850_v26 = vmul.f32 %v1998_v8, %v1998_v8  ;;  %v228_v27 = vmul.f32 1.442695, %v209_v9 }
  0x9e   :  { %3712 = vst [vmem:[#allocation11_spill] sm:$0xff] %v2007_v19  ;;  %3713 = vst [vmem:[#allocation12_spill] sm:$0xff] %v2012_v22  ;;  %v679_v28 = vmul.f32 %v1924_v42, %v1982_v50  ;;  %v982_v31 = vmul.f32 %v966_v12, %v966_v12  ;;  %v2020_v33 = vmul.f32 %v277_v13, %v277_v13  ;;  %1579 = vpow2.f32 %v176_v16 }
  0x9f   :  { %v425_v34 = vmul.f32 %v409_v15, %v409_v15  ;;  %v753_v37 = vmul.f32 %v1948_v60, %v1959_v11  ;;  %v2024_v38 = vpop.eup %1567  ;;  %v821_v30 = vmul.f32 %v805_v14, %v805_v14  ;;  %v953_v40 = vmul.f32 %v937_v17, %v937_v17 }
  0xa0   :  { %3714 = vst [vmem:[#allocation13_spill] sm:$0xff] %v2024_v38  ;;  %v155_v41 = vmul.f32 %v1936_v52, %v1982_v50  ;;  %v2028_v44 = vpop.eup %1569  ;;  %v720_v45 = vmul.f32 1.442695, %v701_v20  ;;  %v259_v46 = vsub.f32 %v135_v5, %v1938_v53  ;;  %v391_v47 = vmul.f32 %v375_v21, %v375_v21 }
  0xa1   :  { %3715 = vst [vmem:[#allocation14_spill] sm:$0xff] %v2028_v44  ;;  %v139_v49 = vmul.f32 %v1920_v39, %v2018_v29  ;;  %v2033_v56 = vpop.eup %1571  ;;  %v2035_v11 = vadd.f32 1.0, %v454_v24  ;;  %v2037_v58 = vmul.f32 %v850_v26, %v850_v26  ;;  %1581 = vpow2.f32 %v228_v27 }
  0xa2   :  { %3716 = vst [vmem:[#allocation15_spill] sm:$0xff] %v2033_v56  ;;  %v919_v61 = vsub.f32 %v679_v28, %v1932_v48  ;;  %v2040_v63 = vpop.eup %1573  ;;  %v998_v0 = vmul.f32 %v982_v31, %v950_v57  ;;  %v309_v51 = vmul.f32 %v2020_v33, %v2020_v33  ;;  %v441_v2 = vmul.f32 %v425_v34, %v425_v34 }
  0xa3   :  { %3717 = vst [vmem:[#allocation16_spill] sm:$0xff] %v2040_v63  ;;  %v772_v4 = vmul.f32 1.442695, %v753_v37  ;;  %v2044_v5 = vmul.f32 %v821_v30, %v821_v30  ;;  %v969_v7 = vmul.f32 %v953_v40, %v953_v40  ;;  %v172_v9 = vmul.f32 1.442695, %v155_v41  ;;  %v2060_v30 = vpop.permute.xlu0 %72 }
  0xa4   :  { %v207_v12 = vmul.f32 %v1940_v54, %v1982_v50  ;;  %1583 = vpow2.f32 %v720_v45  ;;  %v275_v13 = vmul.f32 %v259_v46, %v259_v46  ;;  %v407_v16 = vmul.f32 %v391_v47, %v391_v47 }
  0xa5   :  { %v379_v14 = vsub.f32 %v139_v49, %v1926_v43  ;;  %v699_v57 = vmul.f32 %v1946_v59, %v1982_v50  ;;  %v803_v17 = vsub.f32 %v679_v28, %v1942_v55  ;;  %v935_v20 = vmul.f32 %v919_v61, %v919_v61 }
  0xa6   :  { %v683_v21 = vmul.f32 %v1924_v42, %v2018_v29  ;;  %v2054_v24 = vadd.f32 1.0, %v998_v0  ;;  %v2056_v26 = vmul.f32 %v309_v51, %v309_v51  ;;  %v457_v27 = vmul.f32 %v441_v2, %v409_v15 }
  0xa7   :  { %1585 = vpow2.f32 %v772_v4  ;;  %v853_v31 = vmul.f32 %v2044_v5, %v2044_v5  ;;  %v985_v34 = vmul.f32 %v969_v7, %v969_v7  ;;  %v224_v37 = vmul.f32 1.442695, %v207_v12 }
  0xa8   :  { %1587 = vpow2.f32 %v172_v9  ;;  %v2062_v41 = vpop.eup %1575  ;;  %v2064_v28 = vmul.f32 %v275_v13, %v275_v13  ;;  %v423_v45 = vmul.f32 %v407_v16, %v407_v16  ;;  %v751_v46 = vmul.f32 %v1948_v60, %v1982_v50 }
  0xa9   :  { %3718 = vst [vmem:[#allocation17_spill] sm:$0xff] %v2062_v41  ;;  %v395_v47 = vmul.f32 %v379_v14, %v379_v14  ;;  %v2068_v61 = vpop.eup %1577  ;;  %v716_v15 = vmul.f32 1.442695, %v699_v57  ;;  %v819_v0 = vmul.f32 %v803_v17, %v803_v17  ;;  %v951_v51 = vmul.f32 %v935_v20, %v935_v20 }
  0xaa   :  { %3719 = vst [vmem:[#allocation18_spill] sm:$0xff] %v2068_v61  ;;  %v923_v2 = vsub.f32 %v683_v21, %v1932_v48  ;;  %v2071_v4 = vadd.f32 1.0, %v457_v27  ;;  %v159_v7 = vmul.f32 %v1936_v52, %v2018_v29  ;;  %v263_v9 = vsub.f32 %v139_v49, %v1938_v53 }
  0xab   :  { %v138_v12 = vmul.f32 %v1920_v39, %v2060_v30  ;;  %v2078_v13 = vmul.f32 %v853_v31, %v853_v31  ;;  %v1001_v50 = vmul.f32 %v985_v34, %v953_v40  ;;  %1589 = vpow2.f32 %v224_v37  ;;  %v2082_v57 = vpop.eup %1579 }
  0xac   :  { %3720 = vst [vmem:[#allocation19_spill] sm:$0xff] %v2071_v4  ;;  %v211_v14 = vmul.f32 %v1940_v54, %v2018_v29  ;;  %3721 = vst [vmem:[#allocation20_spill] sm:$0xff] %v2082_v57  ;;  %v307_v17 = vmul.f32 %v2064_v28, %v2064_v28  ;;  %v439_v20 = vmul.f32 %v423_v45, %v423_v45  ;;  %v768_v27 = vmul.f32 1.442695, %v751_v46 }
  0xad   :  { %v411_v3 = vmul.f32 %v395_v47, %v395_v47  ;;  %1591 = vpow2.f32 %v716_v15  ;;  %v2086_v49 = vmul.f32 %v819_v0, %v819_v0  ;;  %v967_v44 = vmul.f32 %v951_v51, %v951_v51 }
  0xae   :  { %v939_v38 = vmul.f32 %v923_v2, %v923_v2  ;;  %v2088_v31 = vpop.eup %1581  ;;  %v180_v40 = vmul.f32 1.442695, %v159_v7  ;;  %v279_v34 = vmul.f32 %v263_v9, %v263_v9  ;;  %v807_v37 = vsub.f32 %v683_v21, %v1942_v55 }
  0xaf   :  { %3722 = vst [vmem:[#allocation21_spill] sm:$0xff] %v2088_v31  ;;  %v378_v22 = vsub.f32 %v138_v12, %v1926_v43  ;;  %v2092_v18 = vadd.f32 1.0, %v1001_v50  ;;  %v232_v57 = vmul.f32 1.442695, %v211_v14  ;;  %v703_v45 = vmul.f32 %v1946_v59, %v2018_v29  ;;  %v2106_v14 = vpop.permute.xlu1 %87 }
  0xb0   :  { %v682_v46 = vmul.f32 %v1924_v42, %v2060_v30  ;;  %v2098_v47 = vmul.f32 %v307_v17, %v307_v17  ;;  %v455_v15 = vmul.f32 %v439_v20, %v407_v16  ;;  %1593 = vpow2.f32 %v768_v27 }
  0xb1   :  { %3723 = vst [vmem:[#allocation22_spill] sm:$0xff] %v2092_v18  ;;  %v427_v0 = vmul.f32 %v411_v3, %v411_v3  ;;  %v2100_v2 = vpop.eup %1583  ;;  %v851_v21 = vmul.f32 %v2086_v49, %v2086_v49  ;;  %v983_v7 = vmul.f32 %v967_v44, %v967_v44  ;;  %v755_v9 = vmul.f32 %v1948_v60, %v2018_v29 }
  0xb2   :  { %3724 = vst [vmem:[#allocation23_spill] sm:$0xff] %v2100_v2  ;;  %v955_v50 = vmul.f32 %v939_v38, %v939_v38  ;;  %1595 = vpow2.f32 %v180_v40  ;;  %v2108_v31 = vmul.f32 %v279_v34, %v279_v34  ;;  %v823_v17 = vmul.f32 %v807_v37, %v807_v37 }
  0xb3   :  { %v394_v19 = vmul.f32 %v378_v22, %v378_v22  ;;  %1597 = vpow2.f32 %v232_v57  ;;  %v724_v20 = vmul.f32 1.442695, %v703_v45  ;;  %v262_v27 = vsub.f32 %v138_v12, %v1938_v53 }
  0xb4   :  { %3725 = vst [vmem:[#allocation24_spill] sm:$0xff] %v2108_v31  ;;  %v2110_v16 = vpop.eup %1585  ;;  %v922_v2 = vsub.f32 %v682_v46, %v1932_v48  ;;  %v2116_v61 = vadd.f32 1.0, %v455_v15  ;;  %v443_v29 = vmul.f32 %v427_v0, %v427_v0  ;;  %v158_v38 = vmul.f32 %v1936_v52, %v2060_v30 }
  0xb5   :  { %3726 = vst [vmem:[#allocation25_spill] sm:$0xff] %v2110_v16  ;;  %v2114_v44 = vpop.eup %1587  ;;  %v141_v40 = vmul.f32 %v1920_v39, %v2106_v14  ;;  %v2122_v22 = vmul.f32 %v851_v21, %v851_v21  ;;  %v999_v34 = vmul.f32 %v983_v7, %v951_v51  ;;  %v776_v57 = vmul.f32 1.442695, %v755_v9 }
  0xb6   :  { %v971_v37 = vmul.f32 %v955_v50, %v955_v50  ;;  %v311_v12 = vmul.f32 %v2108_v31, %v2108_v31  ;;  %v2126_v45 = vmul.f32 %v823_v17, %v823_v17  ;;  %v210_v15 = vmul.f32 %v1940_v54, %v2060_v30 }
  0xb7   :  { %v410_v0 = vmul.f32 %v394_v19, %v394_v19  ;;  %1599 = vpow2.f32 %v724_v20  ;;  %v278_v16 = vmul.f32 %v262_v27, %v262_v27  ;;  %v806_v41 = vsub.f32 %v682_v46, %v1942_v55 }
  0xb8   :  { %3727 = vst [vmem:[#allocation26_spill] sm:$0xff] %v2126_v45  ;;  %v938_v6 = vmul.f32 %v922_v2, %v922_v2  ;;  %v2131_v56 = vpop.eup %1589  ;;  %v459_v21 = vmul.f32 %v443_v29, %v411_v3  ;;  %v178_v51 = vmul.f32 1.442695, %v158_v38  ;;  %v702_v7 = vmul.f32 %v1946_v59, %v2060_v30  ;;  %v2146_v29 = vpop.permute.xlu0 %82 }
  0xb9   :  { %v381_v9 = vsub.f32 %v141_v40, %v1926_v43  ;;  %v2136_v17 = vadd.f32 1.0, %v999_v34  ;;  %1601 = vpow2.f32 %v776_v57  ;;  %v987_v31 = vmul.f32 %v971_v37, %v971_v37 }
  0xba   :  { %v685_v19 = vmul.f32 %v1924_v42, %v2106_v14  ;;  %v2140_v20 = vpop.eup %1591  ;;  %v2142_v46 = vmul.f32 %v311_v12, %v311_v12  ;;  %v855_v3 = vmul.f32 %v2126_v45, %v2126_v45  ;;  %v230_v2 = vmul.f32 1.442695, %v210_v15 }
  0xbb   :  { %3728 = vst [vmem:[#allocation27_spill] sm:$0xff] %v2140_v20  ;;  %v426_v27 = vmul.f32 %v410_v0, %v410_v0  ;;  %v2148_v38 = vmul.f32 %v278_v16, %v278_v16  ;;  %v754_v34 = vmul.f32 %v1948_v60, %v2060_v30  ;;  %v822_v57 = vmul.f32 %v806_v41, %v806_v41 }
  0xbc   :  { %3729 = vst [vmem:[#allocation28_spill] sm:$0xff] %v2142_v46  ;;  %v954_v37 = vmul.f32 %v938_v6, %v938_v6  ;;  %v2152_v63 = vadd.f32 1.0, %v459_v21  ;;  %1603 = vpow2.f32 %v178_v51  ;;  %v722_v36 = vmul.f32 1.442695, %v702_v7 }
  0xbd   :  { %3730 = vst [vmem:[#allocation29_spill] sm:$0xff] %v2148_v38  ;;  %v397_v12 = vmul.f32 %v381_v9, %v381_v9  ;;  %v2154_v46 = vpop.eup %1593  ;;  %v1003_v18 = vmul.f32 %v987_v31, %v955_v50  ;;  %v265_v15 = vsub.f32 %v141_v40, %v1938_v53  ;;  %v925_v45 = vsub.f32 %v685_v19, %v1932_v48 }
  0xbe   :  { %3731 = vst [vmem:[#allocation30_spill] sm:$0xff] %v2152_v63  ;;  %3732 = vst [vmem:[#allocation31_spill] sm:$0xff] %v2154_v46  ;;  %v140_v16 = vmul.f32 %v1920_v39, %v2146_v29  ;;  %v2160_v4 = vmul.f32 %v855_v3, %v855_v3  ;;  %1605 = vpow2.f32 %v230_v2  ;;  %v442_v30 = vmul.f32 %v426_v27, %v426_v27 }
  0xbf   :  { %v161_v6 = vmul.f32 %v1936_v52, %v2106_v14  ;;  %v2164_v41 = vpop.eup %1595  ;;  %v310_v21 = vmul.f32 %v2148_v38, %v2148_v38  ;;  %v774_v31 = vmul.f32 1.442695, %v754_v34  ;;  %v2168_v50 = vmul.f32 %v822_v57, %v822_v57 }
  0xc0   :  { %3733 = vst [vmem:[#allocation32_spill] sm:$0xff] %v2160_v4  ;;  %3734 = vst [vmem:[#allocation33_spill] sm:$0xff] %v2164_v41  ;;  %v970_v40 = vmul.f32 %v954_v37, %v954_v37  ;;  %v2170_v51 = vpop.eup %1597  ;;  %1607 = vpow2.f32 %v722_v36  ;;  %v213_v7 = vmul.f32 %v1940_v54, %v2106_v14  ;;  %v413_v9 = vmul.f32 %v397_v12, %v397_v12 }
  0xc1   :  { %3735 = vst [vmem:[#allocation34_spill] sm:$0xff] %v2168_v50  ;;  %3736 = vst [vmem:[#allocation35_spill] sm:$0xff] %v2170_v51  ;;  %v809_v3 = vsub.f32 %v685_v19, %v1942_v55  ;;  %v2175_v2 = vadd.f32 1.0, %v1003_v18  ;;  %v281_v27 = vmul.f32 %v265_v15, %v265_v15  ;;  %v941_v41 = vmul.f32 %v925_v45, %v925_v45 }
  0xc2   :  { %v380_v63 = vsub.f32 %v140_v16, %v1926_v43  ;;  %v458_v38 = vmul.f32 %v442_v30, %v410_v0  ;;  %v184_v34 = vmul.f32 1.442695, %v161_v6  ;;  %v705_v57 = vmul.f32 %v1946_v59, %v2106_v14  ;;  %v2190_v6 = vpop.permute.xlu1 %97 }
  0xc3   :  { %3737 = vst [vmem:[#allocation36_spill] sm:$0xff] %v2175_v2  ;;  %v684_v36 = vmul.f32 %v1924_v42, %v2146_v29  ;;  %v2182_v51 = vmul.f32 %v310_v21, %v310_v21  ;;  %1609 = vpow2.f32 %v774_v31  ;;  %v854_v19 = vmul.f32 %v2168_v50, %v2168_v50 }
  0xc4   :  { %v986_v18 = vmul.f32 %v970_v40, %v970_v40  ;;  %v2186_v12 = vpop.eup %1599  ;;  %v236_v45 = vmul.f32 1.442695, %v213_v7  ;;  %v429_v15 = vmul.f32 %v413_v9, %v413_v9  ;;  %v757_v0 = vmul.f32 %v1948_v60, %v2106_v14 }
  0xc5   :  { %3738 = vst [vmem:[#allocation37_spill] sm:$0xff] %v2182_v51  ;;  %3739 = vst [vmem:[#allocation38_spill] sm:$0xff] %v2186_v12  ;;  %v825_v30 = vmul.f32 %v809_v3, %v809_v3  ;;  %v2192_v2 = vmul.f32 %v281_v27, %v281_v27  ;;  %v957_v4 = vmul.f32 %v941_v41, %v941_v41  ;;  %v2197_v50 = vadd.f32 1.0, %v458_v38 }
  0xc6   :  { %v264_v21 = vsub.f32 %v140_v16, %v1938_v53  ;;  %v396_v31 = vmul.f32 %v380_v63, %v380_v63  ;;  %v2195_v51 = vpop.eup %1601  ;;  %1611 = vpow2.f32 %v184_v34  ;;  %v728_v40 = vmul.f32 1.442695, %v705_v57 }
  0xc7   :  { %3740 = vst [vmem:[#allocation39_spill] sm:$0xff] %v2192_v2  ;;  %3741 = vst [vmem:[#allocation40_spill] sm:$0xff] %v2195_v51  ;;  %v924_v7 = vsub.f32 %v684_v36, %v1932_v48  ;;  %v2200_v12 = vmul.f32 %v854_v19, %v854_v19  ;;  %v1002_v14 = vmul.f32 %v986_v18, %v954_v37  ;;  %1613 = vpow2.f32 %v236_v45 }
  0xc8   :  { %3742 = vst [vmem:[#allocation41_spill] sm:$0xff] %v2197_v50  ;;  %v160_v3 = vmul.f32 %v1936_v52, %v2146_v29  ;;  %v143_v41 = vmul.f32 %v1920_v39, %v2190_v6  ;;  %v445_v16 = vmul.f32 %v429_v15, %v429_v15  ;;  %v780_v63 = vmul.f32 1.442695, %v757_v0 }
  0xc9   :  { %3743 = vst [vmem:[#allocation42_spill] sm:$0xff] %v2200_v12  ;;  %v2206_v27 = vmul.f32 %v825_v30, %v825_v30  ;;  %v2208_v38 = vpop.eup %1603  ;;  %v313_v34 = vmul.f32 %v2192_v2, %v2192_v2  ;;  %v973_v57 = vmul.f32 %v957_v4, %v957_v4  ;;  %v280_v19 = vmul.f32 %v264_v21, %v264_v21 }
  0xca   :  { %3745 = vst [vmem:[#allocation44_spill] sm:$0xff] %v2208_v38  ;;  %v412_v51 = vmul.f32 %v396_v31, %v396_v31  ;;  %1615 = vpow2.f32 %v728_v40  ;;  %v212_v37 = vmul.f32 %v1940_v54, %v2146_v29  ;;  %v808_v18 = vsub.f32 %v684_v36, %v1942_v55 }
  0xcb   :  { %3744 = vst [vmem:[#allocation43_spill] sm:$0xff] %v2206_v27  ;;  %v940_v50 = vmul.f32 %v924_v7, %v924_v7  ;;  %v2215_v45 = vpop.eup %1605  ;;  %v2217_v15 = vadd.f32 1.0, %v1002_v14  ;;  %v182_v0 = vmul.f32 1.442695, %v160_v3  ;;  %v704_v30 = vmul.f32 %v1946_v59, %v2146_v29 }
  0xcc   :  { %3746 = vst [vmem:[#allocation45_spill] sm:$0xff] %v2215_v45  ;;  %v383_v38 = vsub.f32 %v143_v41, %v1926_v43  ;;  %v461_v2 = vmul.f32 %v445_v16, %v413_v9  ;;  %1617 = vpow2.f32 %v780_v63  ;;  %v857_v21 = vmul.f32 %v2206_v27, %v2206_v27  ;;  %v2234_v63 = vpop.permute.xlu0 %92 }
  0xcd   :  { %3747 = vst [vmem:[#allocation46_spill] sm:$0xff] %v2217_v15  ;;  %v687_v31 = vmul.f32 %v1924_v42, %v2190_v6  ;;  %v2226_v36 = vpop.eup %1607  ;;  %v2228_v40 = vmul.f32 %v313_v34, %v313_v34  ;;  %v989_v7 = vmul.f32 %v973_v57, %v973_v57  ;;  %v2230_v14 = vmul.f32 %v280_v19, %v280_v19 }
  0xce   :  { %3748 = vst [vmem:[#allocation47_spill] sm:$0xff] %v2226_v36  ;;  %v428_v3 = vmul.f32 %v412_v51, %v412_v51  ;;  %v234_v45 = vmul.f32 1.442695, %v212_v37  ;;  %v756_v15 = vmul.f32 %v1948_v60, %v2146_v29  ;;  %v824_v9 = vmul.f32 %v808_v18, %v808_v18 }
  0xcf   :  { %3749 = vst [vmem:[#allocation48_spill] sm:$0xff] %v2228_v40  ;;  %3750 = vst [vmem:[#allocation49_spill] sm:$0xff] %v2230_v14  ;;  %v956_v16 = vmul.f32 %v940_v50, %v940_v50  ;;  %1619 = vpow2.f32 %v182_v0  ;;  %v726_v27 = vmul.f32 1.442695, %v704_v30  ;;  %v267_v12 = vsub.f32 %v143_v41, %v1938_v53 }
  0xd0   :  { %v399_v46 = vmul.f32 %v383_v38, %v383_v38  ;;  %v2237_v36 = vpop.eup %1609  ;;  %v2239_v34 = vadd.f32 1.0, %v461_v2  ;;  %v2241_v57 = vmul.f32 %v857_v21, %v857_v21  ;;  %v163_v19 = vmul.f32 %v1936_v52, %v2190_v6 }
  0xd1   :  { %3751 = vst [vmem:[#allocation50_spill] sm:$0xff] %v2237_v36  ;;  %v927_v29 = vsub.f32 %v687_v31, %v1932_v48  ;;  %v1005_v37 = vmul.f32 %v989_v7, %v957_v4  ;;  %v312_v50 = vmul.f32 %v2230_v14, %v2230_v14  ;;  %v444_v18 = vmul.f32 %v428_v3, %v428_v3 }
  0xd2   :  { %3752 = vst [vmem:[#allocation51_spill] sm:$0xff] %v2239_v34  ;;  %3753 = vst [vmem:[#allocation52_spill] sm:$0xff] %v2241_v57  ;;  %v142_v41 = vmul.f32 %v1920_v39, %v2234_v63  ;;  %1621 = vpow2.f32 %v234_v45  ;;  %v778_v38 = vmul.f32 1.442695, %v756_v15  ;;  %v2250_v0 = vmul.f32 %v824_v9, %v824_v9 }
  0xd3   :  { %v972_v2 = vmul.f32 %v956_v16, %v956_v16  ;;  %v2252_v30 = vpop.eup %1611  ;;  %1623 = vpow2.f32 %v726_v27  ;;  %v215_v21 = vmul.f32 %v1940_v54, %v2190_v6  ;;  %v283_v36 = vmul.f32 %v267_v12, %v267_v12 }
  0xd4   :  { %3754 = vst [vmem:[#allocation53_spill] sm:$0xff] %v2250_v0  ;;  %3755 = vst [vmem:[#allocation54_spill] sm:$0xff] %v2252_v30  ;;  %v415_v4 = vmul.f32 %v399_v46, %v399_v46  ;;  %v188_v7 = vmul.f32 1.442695, %v163_v19  ;;  %v811_v14 = vsub.f32 %v687_v31, %v1942_v55  ;;  %v943_v3 = vmul.f32 %v927_v29, %v927_v29  ;;  %v2259_v45 = vpop.eup %1613 }
  0xd5   :  { %v686_v34 = vmul.f32 %v1924_v42, %v2234_v63  ;;  %3756 = vst [vmem:[#allocation55_spill] sm:$0xff] %v2259_v45  ;;  %v2261_v15 = vadd.f32 1.0, %v1005_v37  ;;  %v2263_v9 = vmul.f32 %v312_v50, %v312_v50  ;;  %v460_v30 = vmul.f32 %v444_v18, %v412_v51  ;;  %v2276_v51 = vpop.permute.xlu1 %107 }
  0xd6   :  { %v382_v27 = vsub.f32 %v142_v41, %v1926_v43  ;;  %1625 = vpow2.f32 %v778_v38  ;;  %v856_v46 = vmul.f32 %v2250_v0, %v2250_v0  ;;  %v988_v12 = vmul.f32 %v972_v2, %v972_v2 }
  0xd7   :  { %3757 = vst [vmem:[#allocation56_spill] sm:$0xff] %v2261_v15  ;;  %3758 = vst [vmem:[#allocation57_spill] sm:$0xff] %v2263_v9  ;;  %v707_v31 = vmul.f32 %v1946_v59, %v2190_v6  ;;  %v2270_v19 = vpop.eup %1615  ;;  %v240_v29 = vmul.f32 1.442695, %v215_v21  ;;  %v2272_v57 = vmul.f32 %v283_v36, %v283_v36  ;;  %v431_v37 = vmul.f32 %v415_v4, %v415_v4 }
  0xd8   :  { %3759 = vst [vmem:[#allocation58_spill] sm:$0xff] %v2270_v19  ;;  %v759_v50 = vmul.f32 %v1948_v60, %v2190_v6  ;;  %1627 = vpow2.f32 %v188_v7  ;;  %v827_v18 = vmul.f32 %v811_v14, %v811_v14  ;;  %v959_v38 = vmul.f32 %v943_v3, %v943_v3 }
  0xd9   :  { %3760 = vst [vmem:[#allocation59_spill] sm:$0xff] %v2272_v57  ;;  %v926_v45 = vsub.f32 %v686_v34, %v1932_v48  ;;  %v2279_v2 = vpop.eup %1617  ;;  %v2281_v0 = vadd.f32 1.0, %v460_v30  ;;  %v162_v21 = vmul.f32 %v1936_v52, %v2234_v63  ;;  %v266_v36 = vsub.f32 %v142_v41, %v1938_v53 }
  0xda   :  { %3761 = vst [vmem:[#allocation60_spill] sm:$0xff] %v2279_v2  ;;  %v398_v19 = vmul.f32 %v382_v27, %v382_v27  ;;  %v2286_v9 = vmul.f32 %v856_v46, %v856_v46  ;;  %v1004_v6 = vmul.f32 %v988_v12, %v956_v16  ;;  %v732_v15 = vmul.f32 1.442695, %v707_v31 }
  0xdb   :  { %3762 = vst [vmem:[#allocation61_spill] sm:$0xff] %v2281_v0  ;;  %v145_v14 = vmul.f32 %v1920_v39, %v2276_v51  ;;  %1629 = vpow2.f32 %v240_v29  ;;  %v315_v7 = vmul.f32 %v2272_v57, %v2272_v57  ;;  %v447_v3 = vmul.f32 %v431_v37, %v431_v37 }
  0xdc   :  { %3763 = vst [vmem:[#allocation62_spill] sm:$0xff] %v2286_v9  ;;  %v784_v30 = vmul.f32 1.442695, %v759_v50  ;;  %v2292_v2 = vpop.eup %1619  ;;  %v2294_v0 = vmul.f32 %v827_v18, %v827_v18  ;;  %v975_v40 = vmul.f32 %v959_v38, %v959_v38  ;;  %v214_v41 = vmul.f32 %v1940_v54, %v2234_v63 }
  0xdd   :  { %3764 = vst [vmem:[#allocation63_spill] sm:$0xff] %v2292_v2  ;;  %v942_v27 = vmul.f32 %v926_v45, %v926_v45  ;;  %v186_v16 = vmul.f32 1.442695, %v162_v21  ;;  %v282_v46 = vmul.f32 %v266_v36, %v266_v36  ;;  %v414_v12 = vmul.f32 %v398_v19, %v398_v19 }
  0xde   :  { %3765 = vst [vmem:[#allocation64_spill] sm:$0xff] %v2294_v0  ;;  %v810_v31 = vsub.f32 %v686_v34, %v1942_v55  ;;  %v2299_v29 = vadd.f32 1.0, %v1004_v6  ;;  %1631 = vpow2.f32 %v732_v15  ;;  %v706_v37 = vmul.f32 %v1946_v59, %v2234_v63  ;;  %v2314_v6 = vpop.permute.xlu0 %102 }
  0xdf   :  { %v385_v50 = vsub.f32 %v145_v14, %v1926_v43  ;;  %v2304_v18 = vpop.eup %1621  ;;  %v2306_v2 = vmul.f32 %v315_v7, %v315_v7  ;;  %v463_v57 = vmul.f32 %v447_v3, %v415_v4  ;;  %1633 = vpow2.f32 %v784_v30 }
  0xe0   :  { %3766 = vst [vmem:[#allocation65_spill] sm:$0xff] %v2299_v29  ;;  %3767 = vst [vmem:[#allocation66_spill] sm:$0xff] %v2304_v18  ;;  %v689_v45 = vmul.f32 %v1924_v42, %v2276_v51  ;;  %v2310_v19 = vpop.eup %1623  ;;  %v859_v34 = vmul.f32 %v2294_v0, %v2294_v0  ;;  %v991_v15 = vmul.f32 %v975_v40, %v975_v40  ;;  %v238_v21 = vmul.f32 1.442695, %v214_v41 }
  0xe1   :  { %3768 = vst [vmem:[#allocation67_spill] sm:$0xff] %v2306_v2  ;;  %3769 = vst [vmem:[#allocation68_spill] sm:$0xff] %v2310_v19  ;;  %v958_v36 = vmul.f32 %v942_v27, %v942_v27  ;;  %1635 = vpow2.f32 %v186_v16  ;;  %v2316_v29 = vmul.f32 %v282_v46, %v282_v46  ;;  %v430_v7 = vmul.f32 %v414_v12, %v414_v12 }
  0xe2   :  { %v826_v18 = vmul.f32 %v810_v31, %v810_v31  ;;  %v730_v4 = vmul.f32 1.442695, %v706_v37  ;;  %v758_v3 = vmul.f32 %v1948_v60, %v2234_v63  ;;  %v269_v30 = vsub.f32 %v145_v14, %v1938_v53 }
  0xe3   :  { %3770 = vst [vmem:[#allocation69_spill] sm:$0xff] %v2316_v29  ;;  %v401_v19 = vmul.f32 %v385_v50, %v385_v50  ;;  %v2321_v2 = vpop.eup %1625  ;;  %v2323_v0 = vadd.f32 1.0, %v463_v57  ;;  %v165_v40 = vmul.f32 %v1936_v52, %v2276_v51  ;;  %v929_v41 = vsub.f32 %v689_v45, %v1932_v48 }
  0xe4   :  { %3771 = vst [vmem:[#allocation70_spill] sm:$0xff] %v2321_v2  ;;  %v144_v27 = vmul.f32 %v1920_v39, %v2314_v6  ;;  %v2330_v16 = vmul.f32 %v859_v34, %v859_v34  ;;  %v1007_v46 = vmul.f32 %v991_v15, %v959_v38  ;;  %1637 = vpow2.f32 %v238_v21 }
  0xe5   :  { %3772 = vst [vmem:[#allocation71_spill] sm:$0xff] %v2323_v0  ;;  %v974_v63 = vmul.f32 %v958_v36, %v958_v36  ;;  %v2332_v31 = vpop.eup %1627  ;;  %v314_v14 = vmul.f32 %v2316_v29, %v2316_v29  ;;  %v446_v57 = vmul.f32 %v430_v7, %v430_v7  ;;  %v2336_v37 = vmul.f32 %v826_v18, %v826_v18 }
  0xe6   :  { %3773 = vst [vmem:[#allocation72_spill] sm:$0xff] %v2330_v16  ;;  %3774 = vst [vmem:[#allocation73_spill] sm:$0xff] %v2332_v31  ;;  %v217_v50 = vmul.f32 %v1940_v54, %v2276_v51  ;;  %1639 = vpow2.f32 %v730_v4  ;;  %v782_v2 = vmul.f32 1.442695, %v758_v3  ;;  %v285_v0 = vmul.f32 %v269_v30, %v269_v30 }
  0xe7   :  { %3775 = vst [vmem:[#allocation74_spill] sm:$0xff] %v2336_v37  ;;  %v417_v9 = vmul.f32 %v401_v19, %v401_v19  ;;  %v192_v34 = vmul.f32 1.442695, %v165_v40  ;;  %v813_v38 = vsub.f32 %v689_v45, %v1942_v55  ;;  %v945_v15 = vmul.f32 %v929_v41, %v929_v41 }
  0xe8   :  { %v384_v21 = vsub.f32 %v144_v27, %v1926_v43  ;;  %v2342_v31 = vpop.eup %1629  ;;  %v2344_v16 = vadd.f32 1.0, %v1007_v46  ;;  %v990_v7 = vmul.f32 %v974_v63, %v974_v63  ;;  %v709_v18 = vmul.f32 %v1946_v59, %v2276_v51  ;;  %v2358_v63 = vpop.permute.xlu1 %117 }
  0xe9   :  { %3776 = vst [vmem:[#allocation75_spill] sm:$0xff] %v2342_v31  ;;  %v688_v4 = vmul.f32 %v1924_v42, %v2314_v6  ;;  %v2350_v3 = vmul.f32 %v314_v14, %v314_v14  ;;  %v462_v19 = vmul.f32 %v446_v57, %v414_v12  ;;  %v858_v45 = vmul.f32 %v2336_v37, %v2336_v37 }
  0xea   :  { %3777 = vst [vmem:[#allocation76_spill] sm:$0xff] %v2344_v16  ;;  %v244_v30 = vmul.f32 1.442695, %v217_v50  ;;  %1641 = vpow2.f32 %v782_v2  ;;  %v2354_v40 = vmul.f32 %v285_v0, %v285_v0  ;;  %v433_v41 = vmul.f32 %v417_v9, %v417_v9 }
  0xeb   :  { %3778 = vst [vmem:[#allocation77_spill] sm:$0xff] %v2350_v3  ;;  %v761_v46 = vmul.f32 %v1948_v60, %v2276_v51  ;;  %v2360_v31 = vpop.eup %1631  ;;  %1643 = vpow2.f32 %v192_v34  ;;  %v829_v29 = vmul.f32 %v813_v38, %v813_v38  ;;  %v961_v14 = vmul.f32 %v945_v15, %v945_v15 }
  0xec   :  { %3779 = vst [vmem:[#allocation78_spill] sm:$0xff] %v2354_v40  ;;  %3780 = vst [vmem:[#allocation79_spill] sm:$0xff] %v2360_v31  ;;  %v400_v3 = vmul.f32 %v384_v21, %v384_v21  ;;  %v2362_v12 = vpop.eup %1633  ;;  %v1006_v57 = vmul.f32 %v990_v7, %v958_v36  ;;  %v736_v37 = vmul.f32 1.442695, %v709_v18  ;;  %v268_v2 = vsub.f32 %v144_v27, %v1938_v53 }
  0xed   :  { %3781 = vst [vmem:[#allocation80_spill] sm:$0xff] %v2362_v12  ;;  %v928_v0 = vsub.f32 %v688_v4, %v1932_v48  ;;  %v2366_v50 = vadd.f32 1.0, %v462_v19  ;;  %v2368_v16 = vmul.f32 %v858_v45, %v858_v45  ;;  %1645 = vpow2.f32 %v244_v30 }
  0xee   :  { %v147_v51 = vmul.f32 %v1920_v39, %v2358_v63  ;;  %v2372_v34 = vpop.eup %1635  ;;  %v317_v38 = vmul.f32 %v2354_v40, %v2354_v40  ;;  %v449_v15 = vmul.f32 %v433_v41, %v433_v41  ;;  %v788_v36 = vmul.f32 1.442695, %v761_v46  ;;  %v2392_v40 = vpop.permute.xlu0 %112 }
  0xef   :  { %3782 = vst [vmem:[#allocation81_spill] sm:$0xff] %v2366_v50  ;;  %3783 = vst [vmem:[#allocation82_spill] sm:$0xff] %v2368_v16  ;;  %v164_v27 = vmul.f32 %v1936_v52, %v2314_v6  ;;  %v2378_v21 = vmul.f32 %v829_v29, %v829_v29  ;;  %v977_v7 = vmul.f32 %v961_v14, %v961_v14  ;;  %v2382_v45 = vadd.f32 1.0, %v1006_v57 }
  0xf0   :  { %3784 = vst [vmem:[#allocation83_spill] sm:$0xff] %v2372_v34  ;;  %v216_v18 = vmul.f32 %v1940_v54, %v2314_v6  ;;  %v416_v19 = vmul.f32 %v400_v3, %v400_v3  ;;  %1647 = vpow2.f32 %v736_v37  ;;  %v284_v30 = vmul.f32 %v268_v2, %v268_v2 }
  0xf1   :  { %3785 = vst [vmem:[#allocation84_spill] sm:$0xff] %v2378_v21  ;;  %3786 = vst [vmem:[#allocation85_spill] sm:$0xff] %v2382_v45  ;;  %v944_v34 = vmul.f32 %v928_v0, %v928_v0  ;;  %v2384_v31 = vpop.eup %1637  ;;  %v708_v41 = vmul.f32 %v1946_v59, %v2314_v6  ;;  %v812_v46 = vsub.f32 %v688_v4, %v1942_v55  ;;  %1649 = vpow2.f32 %v788_v36 }
  0xf2   :  { %3787 = vst [vmem:[#allocation86_spill] sm:$0xff] %v2384_v31  ;;  %v387_v29 = vsub.f32 %v147_v51, %v1926_v43  ;;  %v691_v12 = vmul.f32 %v1924_v42, %v2358_v63  ;;  %v2394_v3 = vmul.f32 %v317_v38, %v317_v38  ;;  %v465_v57 = vmul.f32 %v449_v15, %v417_v9 }
  0xf3   :  { %v190_v37 = vmul.f32 1.442695, %v164_v27  ;;  %v2396_v2 = vpop.eup %1639  ;;  %v861_v0 = vmul.f32 %v2378_v21, %v2378_v21  ;;  %v993_v31 = vmul.f32 %v977_v7, %v977_v7  ;;  %v242_v45 = vmul.f32 1.442695, %v216_v18 }
  0xf4   :  { %3788 = vst [vmem:[#allocation87_spill] sm:$0xff] %v2394_v3  ;;  %3789 = vst [vmem:[#allocation88_spill] sm:$0xff] %v2396_v2  ;;  %v432_v4 = vmul.f32 %v416_v19, %v416_v19  ;;  %v2400_v50 = vmul.f32 %v284_v30, %v284_v30  ;;  %v760_v16 = vmul.f32 %v1948_v60, %v2314_v6  ;;  %v734_v9 = vmul.f32 1.442695, %v708_v41 }
  0xf5   :  { %v960_v20 = vmul.f32 %v944_v34, %v944_v34  ;;  %v146_v38 = vmul.f32 %v1920_v39, %v2392_v40  ;;  %v828_v15 = vmul.f32 %v812_v46, %v812_v46  ;;  %v403_v36 = vmul.f32 %v387_v29, %v387_v29 }
  0xf6   :  { %3790 = vst [vmem:[#allocation89_spill] sm:$0xff] %v2400_v50  ;;  %v931_v27 = vsub.f32 %v691_v12, %v1932_v48  ;;  %v2407_v2 = vadd.f32 1.0, %v465_v57  ;;  %1651 = vpow2.f32 %v190_v37  ;;  %v167_v7 = vmul.f32 %v1936_v52, %v2358_v63 }
  0xf7   :  { %v271_v18 = vsub.f32 %v147_v51, %v1938_v53  ;;  %v2412_v30 = vpop.eup %1641  ;;  %v2414_v6 = vmul.f32 %v861_v0, %v861_v0  ;;  %v1009_v34 = vmul.f32 %v993_v31, %v961_v14  ;;  %1653 = vpow2.f32 %v242_v45 }
  0xf8   :  { %3791 = vst [vmem:[#allocation90_spill] sm:$0xff] %v2407_v2  ;;  %3792 = vst [vmem:[#allocation91_spill] sm:$0xff] %v2412_v30  ;;  %v448_v21 = vmul.f32 %v432_v4, %v432_v4  ;;  %v2416_v41 = vpop.eup %1643  ;;  %v316_v46 = vmul.f32 %v2400_v50, %v2400_v50  ;;  %v786_v29 = vmul.f32 1.442695, %v760_v16  ;;  %v976_v57 = vmul.f32 %v960_v20, %v960_v20 }
  0xf9   :  { %3793 = vst [vmem:[#allocation92_spill] sm:$0xff] %v2416_v41  ;;  %v386_v37 = vsub.f32 %v146_v38, %v1926_v43  ;;  %1655 = vpow2.f32 %v734_v9  ;;  %v2421_v2 = vmul.f32 %v828_v15, %v828_v15  ;;  %v419_v51 = vmul.f32 %v403_v36, %v403_v36 }
  0xfa   :  { %v947_v3 = vmul.f32 %v931_v27, %v931_v27  ;;  %v2423_v30 = vpop.eup %1645  ;;  %v196_v0 = vmul.f32 1.442695, %v167_v7  ;;  %v219_v31 = vmul.f32 %v1940_v54, %v2358_v63  ;;  %v287_v14 = vmul.f32 %v271_v18, %v271_v18 }
  0xfb   :  { %3794 = vst [vmem:[#allocation93_spill] sm:$0xff] %v2421_v2  ;;  %3795 = vst [vmem:[#allocation94_spill] sm:$0xff] %v2423_v30  ;;  %v690_v45 = vmul.f32 %v1924_v42, %v2392_v40  ;;  %v2429_v4 = vadd.f32 1.0, %v1009_v34  ;;  %v464_v16 = vmul.f32 %v448_v21, %v416_v19  ;;  %v711_v9 = vmul.f32 %v1946_v59, %v2358_v63 }
  0xfc   :  { %v815_v15 = vsub.f32 %v691_v12, %v1942_v55  ;;  %v2434_v36 = vmul.f32 %v316_v46, %v316_v46  ;;  %v992_v27 = vmul.f32 %v976_v57, %v976_v57  ;;  %v763_v7 = vmul.f32 %v1948_v60, %v2358_v63 }
  0xfd   :  { %3796 = vst [vmem:[#allocation95_spill] sm:$0xff] %v2429_v4  ;;  %v402_v41 = vmul.f32 %v386_v37, %v386_v37  ;;  %v2438_v30 = vpop.eup %1647  ;;  %1657 = vpow2.f32 %v786_v29  ;;  %v860_v18 = vmul.f32 %v2421_v2, %v2421_v2  ;;  %v435_v34 = vmul.f32 %v419_v51, %v419_v51  ;;  %v2450_v29 = vpop.permute.xlu1 %127 }
  0xfe   :  { %3797 = vst [vmem:[#allocation96_spill] sm:$0xff] %v2434_v36  ;;  %3798 = vst [vmem:[#allocation97_spill] sm:$0xff] %v2438_v30  ;;  %v963_v21 = vmul.f32 %v947_v3, %v947_v3  ;;  %1659 = vpow2.f32 %v196_v0  ;;  %v248_v19 = vmul.f32 1.442695, %v219_v31  ;;  %v2442_v50 = vmul.f32 %v287_v14, %v287_v14  ;;  %v2445_v46 = vpop.eup %1649 }
  0xff   :  { %v930_v12 = vsub.f32 %v690_v45, %v1932_v48  ;;  %3800 = vst [vmem:[#allocation99_spill] sm:$0xff] %v2445_v46  ;;  %v2447_v57 = vadd.f32 1.0, %v464_v16  ;;  %v740_v63 = vmul.f32 1.442695, %v711_v9  ;;  %v831_v37 = vmul.f32 %v815_v15, %v815_v15 }
 0x100   :  { %3799 = vst [vmem:[#allocation98_spill] sm:$0xff] %v2442_v50  ;;  %v270_v30 = vsub.f32 %v146_v38, %v1938_v53  ;;  %v1008_v36 = vmul.f32 %v992_v27, %v960_v20  ;;  %v792_v2 = vmul.f32 1.442695, %v763_v7  ;;  %v166_v3 = vmul.f32 %v1936_v52, %v2392_v40 }
 0x101   :  { %3801 = vst [vmem:[#allocation100_spill] sm:$0xff] %v2447_v57  ;;  %v418_v0 = vmul.f32 %v402_v41, %v402_v41  ;;  %v2454_v31 = vmul.f32 %v860_v18, %v860_v18  ;;  %v451_v14 = vmul.f32 %v435_v34, %v435_v34  ;;  %v979_v4 = vmul.f32 %v963_v21, %v963_v21 }
 0x102   :  { %v814_v46 = vsub.f32 %v690_v45, %v1942_v55  ;;  %1661 = vpow2.f32 %v248_v19  ;;  %v319_v16 = vmul.f32 %v2442_v50, %v2442_v50  ;;  %v946_v9 = vmul.f32 %v930_v12, %v930_v12 }
 0x103   :  { %v149_v38 = vmul.f32 %v1920_v39, %v2450_v29  ;;  %v2461_v20 = vpop.eup %1651  ;;  %1663 = vpow2.f32 %v740_v63  ;;  %v2463_v15 = vmul.f32 %v831_v37, %v831_v37  ;;  %v218_v41 = vmul.f32 %v1940_v54, %v2392_v40 }
 0x104   :  { %3802 = vst [vmem:[#allocation101_spill] sm:$0xff] %v2461_v20  ;;  %v286_v27 = vmul.f32 %v270_v30, %v270_v30  ;;  %v2467_v7 = vpop.eup %1653  ;;  %v2469_v45 = vadd.f32 1.0, %v1008_v36  ;;  %1665 = vpow2.f32 %v792_v2  ;;  %v194_v18 = vmul.f32 1.442695, %v166_v3 }
 0x105   :  { %3803 = vst [vmem:[#allocation102_spill] sm:$0xff] %v2463_v15  ;;  %3804 = vst [vmem:[#allocation103_spill] sm:$0xff] %v2467_v7  ;;  %v434_v34 = vmul.f32 %v418_v0, %v418_v0  ;;  %v467_v19 = vmul.f32 %v451_v14, %v419_v51  ;;  %v995_v12 = vmul.f32 %v979_v4, %v979_v4  ;;  %v246_v3 = vmul.f32 1.442695, %v218_v41 }
 0x106   :  { %3805 = vst [vmem:[#allocation104_spill] sm:$0xff] %v2469_v45  ;;  %v710_v50 = vmul.f32 %v1946_v59, %v2392_v40  ;;  %v830_v20 = vmul.f32 %v814_v46, %v814_v46  ;;  %v2473_v63 = vpop.eup %1655  ;;  %v2475_v37 = vmul.f32 %v319_v16, %v319_v16  ;;  %v762_v30 = vmul.f32 %v1948_v60, %v2392_v40 }
 0x107   :  { %3806 = vst [vmem:[#allocation105_spill] sm:$0xff] %v2473_v63  ;;  %v962_v57 = vmul.f32 %v946_v9, %v946_v9  ;;  %v389_v36 = vsub.f32 %v149_v38, %v1926_v43  ;;  %v863_v2 = vmul.f32 %v2463_v15, %v2463_v15  ;;  %v2482_v51 = vmul.f32 %v286_v27, %v286_v27  ;;  %v2493_v15 = vpop.permute.xlu0 %122 }
 0x108   :  { %3807 = vst [vmem:[#allocation106_spill] sm:$0xff] %v2475_v37  ;;  %v169_v4 = vmul.f32 %v1936_v52, %v2450_v29  ;;  %1667 = vpow2.f32 %v194_v18  ;;  %v450_v46 = vmul.f32 %v434_v34, %v434_v34  ;;  %v273_v14 = vsub.f32 %v149_v38, %v1938_v53 }
 0x109   :  { %3808 = vst [vmem:[#allocation107_spill] sm:$0xff] %v2482_v51  ;;  %v693_v16 = vmul.f32 %v1924_v42, %v2450_v29  ;;  %v2489_v40 = vadd.f32 1.0, %v467_v19  ;;  %v1011_v9 = vmul.f32 %v995_v12, %v963_v21  ;;  %v738_v63 = vmul.f32 1.442695, %v710_v50 }
 0x10a   :  { %v2491_v7 = vmul.f32 %v830_v20, %v830_v20  ;;  %v2495_v41 = vpop.eup %1657  ;;  %v790_v27 = vmul.f32 1.442695, %v762_v30  ;;  %v978_v37 = vmul.f32 %v962_v57, %v962_v57  ;;  %v221_v18 = vmul.f32 %v1940_v54, %v2450_v29 }
 0x10b   :  { %3809 = vst [vmem:[#allocation108_spill] sm:$0xff] %v2489_v40  ;;  %3811 = vst [vmem:[#allocation110_spill] sm:$0xff] %v2495_v41  ;;  %v405_v34 = vmul.f32 %v389_v36, %v389_v36  ;;  %v2499_v38 = vpop.eup %1659  ;;  %v2501_v45 = vmul.f32 %v863_v2, %v863_v2  ;;  %1669 = vpow2.f32 %v246_v3  ;;  %v318_v50 = vmul.f32 %v2482_v51, %v2482_v51  ;;  %v3872_v51 = vld [vmem:[#allocation37_spill] sm:$0xff] }
 0x10c   :  { %3810 = vst [vmem:[#allocation109_spill] sm:$0xff] %v2491_v7  ;;  %3812 = vst [vmem:[#allocation111_spill] sm:$0xff] %v2499_v38  ;;  %v200_v21 = vmul.f32 1.442695, %v169_v4  ;;  %v466_v20 = vmul.f32 %v450_v46, %v418_v0  ;;  %v289_v19 = vmul.f32 %v273_v14, %v273_v14  ;;  %v933_v12 = vsub.f32 %v693_v16, %v1932_v48 }
 0x10d   :  { %3813 = vst [vmem:[#allocation112_spill] sm:$0xff] %v2501_v45  ;;  %v148_v30 = vmul.f32 %v1920_v39, %v2493_v15  ;;  %v2508_v40 = vadd.f32 1.0, %v1011_v9  ;;  %1671 = vpow2.f32 %v738_v63  ;;  %v862_v36 = vmul.f32 %v2491_v7, %v2491_v7 }
 0x10e   :  { %v713_v2 = vmul.f32 %v1946_v59, %v2450_v29  ;;  %1673 = vpow2.f32 %v790_v27  ;;  %v994_v3 = vmul.f32 %v978_v37, %v978_v37  ;;  %v252_v38 = vmul.f32 1.442695, %v221_v18 }
 0x10f   :  { %3814 = vst [vmem:[#allocation113_spill] sm:$0xff] %v2508_v40  ;;  %v421_v4 = vmul.f32 %v405_v34, %v405_v34  ;;  %v2514_v0 = vpop.eup %1661  ;;  %v2516_v46 = vmul.f32 %v318_v50, %v318_v50  ;;  %1675 = vpow2.f32 %v200_v21  ;;  %v765_v39 = vmul.f32 %v1948_v60, %v2450_v29 }
 0x110   :  { %3815 = vst [vmem:[#allocation114_spill] sm:$0xff] %v2514_v0  ;;  %v817_v63 = vsub.f32 %v693_v16, %v1942_v55  ;;  %v2521_v14 = vpop.eup %1663  ;;  %v2523_v9 = vadd.f32 1.0, %v466_v20  ;;  %v2525_v40 = vmul.f32 %v289_v19, %v289_v19  ;;  %v949_v27 = vmul.f32 %v933_v12, %v933_v12 }
 0x111   :  { %3816 = vst [vmem:[#allocation115_spill] sm:$0xff] %v2516_v46  ;;  %3817 = vst [vmem:[#allocation116_spill] sm:$0xff] %v2521_v14  ;;  %v388_v37 = vsub.f32 %v148_v30, %v1926_v43  ;;  %v2528_v18 = vpop.eup %1665  ;;  %v2530_v34 = vmul.f32 %v862_v36, %v862_v36  ;;  %v744_v50 = vmul.f32 1.442695, %v713_v2  ;;  %v692_v21 = vmul.f32 %v1924_v42, %v2493_v15 }
 0x112   :  { %3818 = vst [vmem:[#allocation117_spill] sm:$0xff] %v2523_v9  ;;  %3819 = vst [vmem:[#allocation118_spill] sm:$0xff] %v2525_v40  ;;  %v339_v29 = vmul.f32 %v2098_v47, %v2064_v28  ;;  %v1010_v16 = vmul.f32 %v994_v3, %v962_v57  ;;  %1677 = vpow2.f32 %v252_v38  ;;  %v437_v20 = vmul.f32 %v421_v4, %v421_v4 }
 0x113   :  { %3820 = vst [vmem:[#allocation119_spill] sm:$0xff] %v2528_v18  ;;  %3821 = vst [vmem:[#allocation120_spill] sm:$0xff] %v2530_v34  ;;  %v168_v19 = vmul.f32 %v1936_v52, %v2493_v15  ;;  %v796_v12 = vmul.f32 1.442695, %v765_v39  ;;  %v833_v14 = vmul.f32 %v817_v63, %v817_v63  ;;  %v220_v43 = vmul.f32 %v1940_v54, %v2493_v15 }
 0x114   :  { %v883_v36 = vmul.f32 %v2122_v22, %v2086_v49  ;;  %v2544_v42 = vmul.f32 %v2525_v40, %v2525_v40  ;;  %v965_v2 = vmul.f32 %v949_v27, %v949_v27  ;;  %v272_v28 = vsub.f32 %v148_v30, %v1938_v53 }
 0x115   :  { %v404_v47 = vmul.f32 %v388_v37, %v388_v37  ;;  %v2547_v57 = vpop.eup %1667  ;;  %1679 = vpow2.f32 %v744_v50  ;;  %v932_v52 = vsub.f32 %v692_v21, %v1932_v48  ;;  %v2550_v38 = vadd.f32 1.0, %v339_v29 }
 0x116   :  { %3822 = vst [vmem:[#allocation121_spill] sm:$0xff] %v2544_v42  ;;  %3823 = vst [vmem:[#allocation122_spill] sm:$0xff] %v2547_v57  ;;  %v338_v54 = vmul.f32 %v2002_v10, %v1971_v32  ;;  %v2554_v3 = vadd.f32 1.0, %v1010_v16  ;;  %v453_v49 = vmul.f32 %v437_v20, %v437_v20  ;;  %v198_v22 = vmul.f32 1.442695, %v168_v19  ;;  %v3862_v42 = vld [vmem:[#allocation28_spill] sm:$0xff] }
 0x117   :  { %v712_v39 = vmul.f32 %v1946_v59, %v2493_v15  ;;  %v2558_v63 = vmul.f32 %v833_v14, %v833_v14  ;;  %v250_v53 = vmul.f32 1.442695, %v220_v43  ;;  %v2560_v30 = vadd.f32 1.0, %v883_v36 }
 0x118   :  { %3824 = vst [vmem:[#allocation123_spill] sm:$0xff] %v2554_v3  ;;  %v882_v48 = vmul.f32 %v2037_v58, %v1998_v8  ;;  %v2564_v27 = vpop.eup %1669  ;;  %v981_v37 = vmul.f32 %v965_v2, %v965_v2  ;;  %v288_v50 = vmul.f32 %v272_v28, %v272_v28  ;;  %v420_v32 = vmul.f32 %v404_v47, %v404_v47 }
 0x119   :  { %3825 = vst [vmem:[#allocation124_spill] sm:$0xff] %v2558_v63  ;;  %3826 = vst [vmem:[#allocation125_spill] sm:$0xff] %v2564_v27  ;;  %v764_v10 = vmul.f32 %v1948_v60, %v2493_v15  ;;  %1681 = vpow2.f32 %v796_v12  ;;  %v948_v29 = vmul.f32 %v932_v52, %v932_v52  ;;  %v487_v59 = vmul.f32 %v2116_v61, %v2550_v38 }
 0x11a   :  { %v2570_v14 = vadd.f32 1.0, %v338_v54  ;;  %v2572_v16 = vpop.eup %1671  ;;  %1683 = vpow2.f32 %v198_v22  ;;  %v742_v20 = vmul.f32 1.442695, %v712_v39  ;;  %v816_v8 = vsub.f32 %v692_v21, %v1942_v55 }
 0x11b   :  { %3827 = vst [vmem:[#allocation126_spill] sm:$0xff] %v2572_v16  ;;  %v2575_v58 = vadd.f32 1.0, %v882_v48  ;;  %v2577_v19 = vpop.eup %1673  ;;  %v469_v43 = vmul.f32 %v453_v49, %v421_v4  ;;  %v2581_v60 = vmul.f32 %v2558_v63, %v2558_v63  ;;  %1685 = vpow2.f32 %v250_v53  ;;  %v47_v53 = vld [vmem:[%s3620_s2] sm:$0x1]  ;;  %v3853_v16 = vld [vmem:[#allocation17_spill] sm:$0xff] }
 0x11c   :  { %3828 = vst [vmem:[#allocation127_spill] sm:$0xff] %v2577_v19  ;;  %v1031_v15 = vmul.f32 %v2136_v17, %v2560_v30  ;;  %v2585_v12 = vpop.eup %1675  ;;  %v997_v36 = vmul.f32 %v981_v37, %v981_v37  ;;  %v2587_v28 = vmul.f32 %v288_v50, %v288_v50  ;;  %v436_v47 = vmul.f32 %v420_v32, %v420_v32  ;;  %v3847_v19 = vld [vmem:[#allocation8_spill] sm:$0xff]  ;;  %v3858_v63 = vld [vmem:[#allocation21_spill] sm:$0xff] }
 0x11d   :  { %3829 = vst [vmem:[#allocation128_spill] sm:$0xff] %v2581_v60  ;;  %3830 = vst [vmem:[#allocation129_spill] sm:$0xff] %v2585_v12  ;;  %v794_v55 = vmul.f32 1.442695, %v764_v10  ;;  %v964_v21 = vmul.f32 %v948_v29, %v948_v29  ;;  %v520_v52 = vsub.s32 3, %v1908_v35  ;;  %1687 = vrcp.f32 %v487_v59 }
 0x11e   :  { %3831 = vst [vmem:[#allocation130_spill] sm:$0xff] %v2587_v28  ;;  %v486_v4 = vmul.f32 %v2035_v11, %v2570_v14  ;;  %1689 = vpow2.f32 %v742_v20  ;;  %v832_v54 = vmul.f32 %v816_v8, %v816_v8  ;;  %v1030_v49 = vmul.f32 %v2054_v24, %v2575_v58  ;;  %v1787_v20 = vld [vmem:[%s3621_s3] sm:$0xff] }
 0x11f   :  { %v341_v22 = vmul.f32 %v2056_v26, %v2020_v33  ;;  %v2596_v39 = vpop.eup %1677  ;;  %v572_v48 = vsub.s32 4, %v1908_v35  ;;  %v608_v37 = vsub.s32 5, %v1908_v35  ;;  %1691 = vrcp.f32 %v1031_v15 }
 0x120   :  { %3832 = vst [vmem:[#allocation131_spill] sm:$0xff] %v2596_v39  ;;  %v885_v50 = vmul.f32 %v2078_v13, %v2044_v5  ;;  %v2605_v10 = vadd.f32 1.0, %v469_v43  ;;  %v2609_v29 = vmul.f32 %v2587_v28, %v2587_v28  ;;  %v452_v33 = vmul.f32 %v436_v47, %v436_v47 }
 0x121   :  { %1693 = vpow2.f32 %v794_v55  ;;  %v1013_v26 = vmul.f32 %v997_v36, %v965_v2  ;;  %v980_v59 = vmul.f32 %v964_v21, %v964_v21  ;;  %v2614_v8 = vrot.slane %v1787_v20, %v520_v52  ;;  %v1788_v55 = vld [vmem:[%s3621_s3 + $0x8] sm:$0xff] }
 0x122   :  { %3833 = vst [vmem:[#allocation132_spill] sm:$0xff] %v2605_v10  ;;  %3834 = vst [vmem:[#allocation133_spill] sm:$0xff] %v2609_v29  ;;  %1695 = vrcp.f32 %v486_v4  ;;  %v2616_v35 = vpop.eup %1679  ;;  %v2618_v5 = vmul.f32 %v832_v54, %v832_v54  ;;  %vm1394_vm0 = vcmp.le.f32.partialorder %v47_v53, 5.0  ;;  %v2620_v13 = vadd.f32 1.0, %v341_v22  ;;  %v3855_v29 = vld [vmem:[#allocation11_spill] sm:$0xff] }
 0x123   :  { %3835 = vst [vmem:[#allocation134_spill] sm:$0xff] %v2616_v35  ;;  %1697 = vrcp.f32 %v1030_v49  ;;  %v2622_v43 = vrot.slane %v1787_v20, %v572_v48  ;;  %v2624_v15 = vrot.slane %v1787_v20, %v608_v37  ;;  %v2626_v2 = vadd.f32 1.0, %v885_v50 }
 0x124   :  { %3836 = vst [vmem:[#allocation135_spill] sm:$0xff] %v2618_v5  ;;  %v340_v36 = vmul.f32 %v1987_v62, %v1966_v23  ;;  %v468_v47 = vmul.f32 %v452_v33, %v420_v32  ;;  %v2633_v4 = vrot.slane %v1788_v55, %v520_v52  ;;  %v2635_v54 = vrot.slane %v1788_v55, %v608_v37  ;;  %v3839_v52 = vld [vmem:[#allocation27_spill] sm:$0xff] }
 0x125   :  { %v884_v49 = vmul.f32 %v1992_v1, %v1968_v25  ;;  %v996_v22 = vmul.f32 %v980_v59, %v980_v59  ;;  %v3837_v53 = vmov 0   ;;  %v575_v50 = vmul.f32 %v2131_v56, %v2622_v43  ;;  %v3840_v1 = vld [vmem:[#allocation19_spill] sm:$0xff] }
 0x126   :  { %v2640_v20 = vsel %vm1394_vm0, 1, %v3837_v53  ;;  %v611_v23 = vmul.f32 %v2114_v44, %v2624_v15  ;;  %v2646_v62 = vpop.eup %1681  ;;  %v2650_v32 = vmul.f32 %v2114_v44, %v2614_v8  ;;  %v2654_v37 = vmul.f32 %v3839_v52, %v2633_v4 }
 0x127   :  { %3838 = vst [vmem:[#allocation136_spill] sm:$0xff] %v2646_v62  ;;  %v1155_v25 = vmul.f32 %v3839_v52, %v2635_v54  ;;  %v489_v33 = vmul.f32 %v3840_v1, %v2620_v13  ;;  %v2660_v56 = vpop.eup %1683  ;;  %v2662_v59 = vadd.f32 1.0, %v1013_v26  ;;  %v2664_v53 = vrot.slane %v1788_v55, %v572_v48  ;;  %v3843_v62 = vld [vmem:[#allocation22_spill] sm:$0xff] }
 0x128   :  { %3841 = vst [vmem:[#allocation27_spill] sm:$0xff] %v2660_v56  ;;  %v1033_v44 = vmul.f32 %v3843_v62, %v2626_v2  ;;  %v2668_v39 = vadd.f32 1.0, %v340_v36  ;;  %v2670_v35 = vpop.eup %1685  ;;  %v2672_v12 = vadd.f32 1.0, %v468_v47  ;;  %v2676_v52 = vmul.f32 %v2618_v5, %v2618_v5 }
 0x129   :  { %3842 = vst [vmem:[#allocation19_spill] sm:$0xff] %v2662_v59  ;;  %3844 = vst [vmem:[#allocation22_spill] sm:$0xff] %v2670_v35  ;;  %v2680_v26 = vadd.f32 1.0, %v884_v49  ;;  %v1012_v48 = vmul.f32 %v996_v22, %v964_v21  ;;  %v2683_v55 = vmul.f32 %v575_v50, %v2550_v38  ;;  %v2686_v36 = vmul.f32 %v611_v23, %v2116_v61  ;;  %v3848_v35 = vld [vmem:[#allocation31_spill] sm:$0xff]  ;;  %v3849_v49 = vld [vmem:[#allocation16_spill] sm:$0xff] }
 0x12a   :  { %3845 = vst [vmem:[#allocation137_spill] sm:$0xff] %v2672_v12  ;;  %3846 = vst [vmem:[#allocation138_spill] sm:$0xff] %v2676_v52  ;;  %v1119_v47 = vmul.f32 %v3848_v35, %v2664_v53  ;;  %v2690_v12 = vpop.eup %1687  ;;  %v2693_v5 = vmul.f32 %v1155_v25, %v2136_v17  ;;  %v1219_v56 = vmul.f32 %v2654_v37, %v2650_v32  ;;  %1699 = vrcp.f32 %v489_v33  ;;  %v3851_v50 = vld [vmem:[#allocation15_spill] sm:$0xff]  ;;  %v3852_v25 = vld [vmem:[#allocation9_spill] sm:$0xff] }
 0x12b   :  { %v574_v21 = vmul.f32 %v3849_v49, %v2622_v43  ;;  %v2699_v22 = vpop.eup %1689  ;;  %v2703_v23 = vmul.f32 %v3851_v50, %v2614_v8  ;;  %v610_v35 = vmul.f32 %v3851_v50, %v2624_v15  ;;  %1701 = vrcp.f32 %v1033_v44  ;;  %v3854_v49 = vld [vmem:[#allocation18_spill] sm:$0xff] }
 0x12c   :  { %3850 = vst [vmem:[#allocation8_spill] sm:$0xff] %v2699_v22  ;;  %v488_v52 = vmul.f32 %v3852_v25, %v2668_v39  ;;  %v1692_v28 = vpop.eup %1691  ;;  %v1066_v27 = vmul.f32 %v3853_v16, %v2633_v4  ;;  %v1118_v33 = vmul.f32 %v3854_v49, %v2664_v53  ;;  %v1154_v22 = vmul.f32 %v3853_v16, %v2635_v54  ;;  %v3859_v16 = vld [vmem:[#allocation20_spill] sm:$0xff] }
 0x12d   :  { %v1032_v59 = vmul.f32 %v3855_v29, %v2680_v26  ;;  %v2719_v50 = vadd.f32 1.0, %v1012_v48  ;;  %v539_v44 = vmul.f32 %v2690_v12, %v2116_v61  ;;  %v1135_v10 = vmul.f32 %v1119_v47, %v2560_v30 }
 0x12e   :  { %v2717_v57 = vpop.eup %1693  ;;  %v577_v40 = vmul.f32 %v3858_v63, %v2622_v43  ;;  %v2729_v49 = vmul.f32 %v574_v21, %v2570_v14  ;;  %v2733_v18 = vmul.f32 %v3859_v16, %v2614_v8  ;;  %v613_v48 = vmul.f32 %v3859_v16, %v2624_v15  ;;  %v3861_v21 = vld [vmem:[#allocation24_spill] sm:$0xff] }
 0x12f   :  { %3856 = vst [vmem:[#allocation31_spill] sm:$0xff] %v2717_v57  ;;  %3857 = vst [vmem:[#allocation16_spill] sm:$0xff] %v2719_v50  ;;  %v2726_v60 = vpop.eup %1695  ;;  %v3860_v57 = vld [vmem:[#allocation23_spill] sm:$0xff]  ;;  %v1083_v63 = vmul.f32 %v1692_v28, %v2136_v17  ;;  %v626_v50 = vmul.f32 %v610_v35, %v2035_v11  ;;  %1703 = vrcp.f32 %v488_v52  ;;  %v343_v0 = vmul.f32 %v3862_v42, %v3861_v21  ;;  %v3863_v17 = vld [vmem:[#allocation25_spill] sm:$0xff] }
 0x130   :  { %v2739_v61 = vmul.f32 %v3860_v57, %v2633_v4  ;;  %v2741_v47 = vpop.eup %1697  ;;  %v2748_v3 = vmul.f32 %v1118_v33, %v2575_v58  ;;  %v2751_v9 = vmul.f32 %v1154_v22, %v2054_v24  ;;  %v1218_v16 = vmul.f32 %v1066_v27, %v2703_v23 }
 0x131   :  { %1705 = vrcp.f32 %v1032_v59  ;;  %v555_v41 = vmul.f32 %v539_v44, %v2650_v32  ;;  %v2756_v34 = vmul.f32 %v577_v40, %v2620_v13  ;;  %v1121_v52 = vmul.f32 %v3863_v17, %v2664_v53  ;;  %v3865_v17 = vld [vmem:[#allocation32_spill] sm:$0xff] }
 0x132   :  { %v1157_v42 = vmul.f32 %v3860_v57, %v2635_v54  ;;  %v538_v35 = vmul.f32 %v2726_v60, %v2035_v11  ;;  %v1082_v22 = vmul.f32 %v2741_v47, %v2054_v24  ;;  %v2767_v33 = vmul.f32 %v613_v48, %v3840_v1  ;;  %v3864_v24 = vld [vmem:[#allocation26_spill] sm:$0xff] }
 0x133   :  { %v1221_v59 = vmul.f32 %v2739_v61, %v2733_v18  ;;  %v643_v40 = vsub.f32 %v2683_v55, %v2686_v36  ;;  %v1099_v44 = vmul.f32 %v1083_v63, %v2654_v37  ;;  %1707 = vrcp.f32 %v1219_v56 }
 0x134   :  { %v2774_v21 = vadd.f32 1.0, %v343_v0  ;;  %v1187_v57 = vsub.f32 %v1135_v10, %v2693_v5  ;;  %v642_v11 = vsub.f32 %v2729_v49, %v626_v50  ;;  %1709 = vrcp.f32 %v1218_v16  ;;  %v3868_v49 = vld [vmem:[#allocation30_spill] sm:$0xff]  ;;  %v3871_v5 = vld [vmem:[#allocation29_spill] sm:$0xff] }
 0x135   :  { %v887_v48 = vmul.f32 %v3865_v17, %v3864_v24  ;;  %v1299_v7 = vmul.f32 %v555_v41, %v2650_v32  ;;  %v1186_v46 = vsub.f32 %v2748_v3, %v2751_v9  ;;  %v2784_v55 = vmul.f32 %v1121_v52, %v2626_v2  ;;  %v3866_v32 = vld [vmem:[#allocation10_spill] sm:$0xff]  ;;  %v3867_v3 = vld [vmem:[#allocation12_spill] sm:$0xff] }
 0x136   :  { %v2787_v56 = vmul.f32 %v1157_v42, %v3843_v62  ;;  %v554_v0 = vmul.f32 %v538_v35, %v2703_v23  ;;  %v1098_v10 = vmul.f32 %v1082_v22, %v1066_v27  ;;  %1711 = vrcp.f32 %v1221_v59  ;;  %v3869_v35 = vld [vmem:[#allocation13_spill] sm:$0xff]  ;;  %v3870_v17 = vld [vmem:[#allocation14_spill] sm:$0xff] }
 0x137   :  { %v2792_v36 = vpop.eup %1699  ;;  %v1251_v41 = vmul.f32 %v1099_v44, %v2654_v37  ;;  %v2797_v9 = vmul.f32 %v3866_v32, %v2614_v8  ;;  %v576_v50 = vmul.f32 %v3867_v3, %v2622_v43  ;;  %v491_v63 = vmul.f32 %v3868_v49, %v2774_v21  ;;  %v2831_v44 = vpop.permute.xlu1 %1415 }
 0x138   :  { %v2803_v16 = vpop.eup %1701  ;;  %v659_v52 = vmul.f32 %v2690_v12, %v643_v40  ;;  %v612_v42 = vmul.f32 %v3866_v32, %v2624_v15  ;;  %v1156_v37 = vmul.f32 %v3869_v35, %v2635_v54  ;;  %v2810_v22 = vadd.f32 1.0, %v887_v48 }
 0x139   :  { %v1315_v59 = vmul.f32 %v1299_v7, %v2560_v30  ;;  %v2817_v24 = vmul.f32 %v3869_v35, %v2633_v4  ;;  %v1120_v12 = vmul.f32 %v3870_v17, %v2664_v53  ;;  %v1203_v40 = vmul.f32 %v1692_v28, %v1187_v57 }
 0x13a   :  { %v1250_v3 = vmul.f32 %v1098_v10, %v1066_v27  ;;  %v1298_v32 = vmul.f32 %v554_v0, %v2703_v23  ;;  %v342_v48 = vmul.f32 %v3872_v51, %v3871_v5  ;;  %v1267_v45 = vmul.f32 %v1251_v41, %v2550_v38  ;;  %v3873_v38 = vld [vmem:[#allocation36_spill] sm:$0xff] }
 0x13b   :  { %v541_v7 = vmul.f32 %v2792_v36, %v3840_v1  ;;  %v1085_v30 = vmul.f32 %v2803_v16, %v3843_v62  ;;  %1713 = vrcp.f32 %v491_v63  ;;  %v2834_v27 = vmul.f32 %v576_v50, %v2668_v39  ;;  %v3874_v63 = vld [vmem:[#allocation34_spill] sm:$0xff] }
 0x13c   :  { %v2829_v35 = vpop.eup %1703  ;;  %v2837_v28 = vmul.f32 %v612_v42, %v3852_v25  ;;  %v2840_v51 = vmul.f32 %v1156_v37, %v3855_v29  ;;  %v1035_v1 = vmul.f32 %v3873_v38, %v2810_v22  ;;  %v1331_v62 = vmul.f32 %v1315_v59, %v1203_v40  ;;  %v3875_v42 = vld [vmem:[#allocation42_spill] sm:$0xff] }
 0x13d   :  { %v658_v57 = vmul.f32 %v2726_v60, %v642_v11  ;;  %v2848_v0 = vmul.f32 %v1120_v12, %v2680_v26  ;;  %v1220_v10 = vmul.f32 %v2817_v24, %v2797_v9  ;;  %v1266_v5 = vmul.f32 %v1250_v3, %v2570_v14  ;;  %v2867_v14 = vpop.permute.xlu0 %1412 }
 0x13e   :  { %v2844_v23 = vpop.eup %1705  ;;  %v1314_v41 = vmul.f32 %v1298_v32, %v2575_v58  ;;  %v2854_v50 = vadd.f32 1.0, %v342_v48  ;;  %v886_v37 = vmul.f32 %v3875_v42, %v3874_v63  ;;  %v3876_v59 = vrot.slane %v2640_v20, %v3847_v19  ;;  %v3880_v32 = vld [vmem:[#allocation48_spill] sm:$0xff] }
 0x13f   :  { %v1283_v11 = vmul.f32 %v1267_v45, %v659_v52  ;;  %vm1460_vm2 = vcmp.eq.s32.totalorder %v2831_v44, 1  ;;  %v1202_v17 = vmul.f32 %v2741_v47, %v1186_v46  ;;  %v557_v58 = vmul.f32 %v541_v7, %v2733_v18  ;;  %v3879_v52 = vld [vmem:[#allocation39_spill] sm:$0xff] }
 0x140   :  { %vm2861_vm1 = vcmp.eq.s32.totalorder %v3876_v59, 1  ;;  %v1101_v12 = vmul.f32 %v1085_v30, %v2739_v61  ;;  %v1708_v40 = vpop.eup %1707  ;;  %v540_v3 = vmul.f32 %v2829_v35, %v3852_v25  ;;  %v1084_v19 = vmul.f32 %v2844_v23, %v3855_v29  ;;  %v3881_v29 = vld [vmem:[#allocation35_spill] sm:$0xff]  ;;  %v3885_v59 = vld [vmem:[#allocation52_spill] sm:$0xff] }
 0x141   :  { %1715 = vrcp.f32 %v1035_v1  ;;  %v2875_v20 = vadd.f32 1.0, %v886_v37  ;;  %v1710_v45 = vpop.eup %1709  ;;  %v644_v46 = vsub.f32 %v2834_v27, %v2837_v28  ;;  %v1188_v47 = vsub.f32 %v2848_v0, %v2840_v51  ;;  %v3882_v1 = vld [vmem:[#allocation41_spill] sm:$0xff]  ;;  %v3883_v0 = vld [vmem:[#allocation46_spill] sm:$0xff]  ;;  %v3884_v37 = vld [vmem:[#allocation43_spill] sm:$0xff] }
 0x142   :  { %1717 = vrcp.f32 %v1220_v10  ;;  %v345_v48 = vmul.f32 %v3880_v32, %v3879_v52  ;;  %v1282_v7 = vmul.f32 %v1266_v5, %v658_v57  ;;  %v1330_v30 = vmul.f32 %v1314_v41, %v1202_v17  ;;  %vm2940_vm4 = vmand %vm1460_vm2, %vm2861_vm1 }
 0x143   :  { %vm1459_vm3 = vcmp.eq.s32.totalorder %v2867_v14, 1  ;;  %v579_v25 = vmul.f32 %v3881_v29, %v2622_v43  ;;  %v490_v63 = vmul.f32 %v3882_v1, %v2854_v50  ;;  %v2888_v42 = vpop.eup %1711  ;;  %v1347_v27 = vadd.f32 %v1331_v62, %v1283_v11 }
 0x144   :  { %v1253_v28 = vmul.f32 %v1101_v12, %v2739_v61  ;;  %v1301_v51 = vmul.f32 %v557_v58, %v2733_v18  ;;  %v1034_v10 = vmul.f32 %v3883_v0, %v2875_v20  ;;  %v556_v57 = vmul.f32 %v540_v3, %v2797_v9  ;;  %v3887_v61 = vld [vmem:[#allocation33_spill] sm:$0xff]  ;;  %v3888_v58 = vld [vmem:[#allocation40_spill] sm:$0xff]  ;;  %vm2963_vm6 = vmand %vm1459_vm3, %vm2861_vm1 }
 0x145   :  { %v1100_v5 = vmul.f32 %v1084_v19, %v2817_v24  ;;  %v2896_v41 = vadd.f32 1.0, %v345_v48  ;;  %v889_v17 = vmul.f32 %v3885_v59, %v3884_v37  ;;  %v3886_v52 = vsub.f32 %v2756_v34, %v2767_v33  ;;  %v3889_v19 = vld [vmem:[#allocation38_spill] sm:$0xff] }
 0x146   :  { %v2906_v18 = vmul.f32 %v3887_v61, %v2614_v8  ;;  %v615_v11 = vmul.f32 %v3887_v61, %v2624_v15  ;;  %v1123_v12 = vmul.f32 %v3888_v58, %v2664_v53  ;;  %v1346_v3 = vadd.f32 %v1330_v30, %v1282_v7  ;;  %v3890_v7 = vld [vmem:[#allocation51_spill] sm:$0xff] }
 0x147   :  { %v661_v62 = vmul.f32 %v2792_v36, %v3886_v52  ;;  %v1159_v32 = vmul.f32 %v3889_v19, %v2635_v54  ;;  %1719 = vrcp.f32 %v490_v63  ;;  %v2914_v48 = vadd.f32 1.0, %v889_v17 }
 0x148   :  { %v1363_v34 = vmul.f32 %v1708_v40, %v1347_v27  ;;  %v1269_v33 = vmul.f32 %v1253_v28, %v2620_v13  ;;  %v1317_v36 = vmul.f32 %v1301_v51, %v2626_v2  ;;  %1721 = vrcp.f32 %v1034_v10  ;;  %v1714_v29 = vpop.eup %1713  ;;  %v2927_v27 = vpop.permute.xlu1 %1421  ;;  %v3895_v28 = vld [vmem:[#allocation49_spill] sm:$0xff] }
 0x149   :  { %v1252_v37 = vmul.f32 %v1100_v5, %v2817_v24  ;;  %v1300_v59 = vmul.f32 %v556_v57, %v2797_v9  ;;  %v595_v52 = vmul.f32 %v579_v25, %v2774_v21  ;;  %v493_v30 = vmul.f32 %v3890_v7, %v2896_v41  ;;  %v3892_v9 = vld [vmem:[#allocation56_spill] sm:$0xff]  ;;  %v3896_v51 = vld [vmem:[#allocation57_spill] sm:$0xff] }
 0x14a   :  { %v3891_v63 = vsub.f32 %v2784_v55, %v2787_v56  ;;  %v631_v13 = vmul.f32 %v615_v11, %v3868_v49  ;;  %v2932_v2 = vmul.f32 %v3889_v19, %v2633_v4  ;;  %v1037_v24 = vmul.f32 %v3892_v9, %v2914_v48  ;;  %v3899_v19 = vld [vmem:[#allocation53_spill] sm:$0xff] }
 0x14b   :  { %v1362_v55 = vmul.f32 %v1710_v45, %v1346_v3  ;;  %v2945_v56 = vmul.f32 %v1123_v12, %v2810_v22  ;;  %v344_v10 = vmul.f32 %v3896_v51, %v3895_v28  ;;  %v1498_v57 = vsel %vm2940_vm4, %v1363_v34, 0.0  ;;  %v3905_v28 = vld [vmem:[#allocation50_spill] sm:$0xff] }
 0x14c   :  { %v1205_v40 = vmul.f32 %v2803_v16, %v3891_v63  ;;  %v2948_v16 = vmul.f32 %v1159_v32, %v3873_v38  ;;  %v1285_v5 = vmul.f32 %v1269_v33, %v661_v62  ;;  %v543_v44 = vmul.f32 %v1714_v29, %v3868_v49  ;;  %v2967_v62 = vpop.permute.xlu0 %1418  ;;  %v3900_v32 = vld [vmem:[#allocation62_spill] sm:$0xff] }
 0x14d   :  { %vm1462_vm5 = vcmp.eq.s32.totalorder %v2927_v27, 1  ;;  %v660_v45 = vmul.f32 %v2829_v35, %v644_v46  ;;  %v1268_v61 = vmul.f32 %v1252_v37, %v2668_v39  ;;  %v1316_v11 = vmul.f32 %v1300_v59, %v2680_v26  ;;  %v3901_v37 = vld [vmem:[#allocation45_spill] sm:$0xff] }
 0x14e   :  { %v1333_v17 = vmul.f32 %v1317_v36, %v1205_v40  ;;  %1723 = vrcp.f32 %v493_v30  ;;  %v1716_v58 = vpop.eup %1715  ;;  %v647_v49 = vsub.f32 %v595_v52, %v631_v13  ;;  %v1223_v35 = vmul.f32 %v2932_v2, %v2906_v18  ;;  %v3902_v52 = vld [vmem:[#allocation44_spill] sm:$0xff]  ;;  %vm3035_vm8 = vmand %vm1462_vm5, %vm2861_vm1 }
 0x14f   :  { %1725 = vrcp.f32 %v1037_v24  ;;  %v2971_v39 = vadd.f32 1.0, %v344_v10  ;;  %v1718_v26 = vpop.eup %1717  ;;  %v1497_v46 = vsel %vm2963_vm6, %v1362_v55, 0.0  ;;  %v1204_v3 = vmul.f32 %v2844_v23, %v1188_v47  ;;  %v3903_v24 = vld [vmem:[#allocation47_spill] sm:$0xff]  ;;  %v3904_v55 = vld [vmem:[#allocation61_spill] sm:$0xff] }
 0x150   :  { %v1191_v14 = vsub.f32 %v2945_v56, %v2948_v16  ;;  %v888_v34 = vmul.f32 %v3900_v32, %v3899_v19  ;;  %v1349_v33 = vadd.f32 %v1333_v17, %v1285_v5  ;;  %v559_v36 = vmul.f32 %v543_v44, %v2906_v18  ;;  %v3906_v10 = vld [vmem:[#allocation65_spill] sm:$0xff]  ;;  %v3908_v19 = vld [vmem:[#allocation67_spill] sm:$0xff] }
 0x151   :  { %v578_v59 = vmul.f32 %v3901_v37, %v2622_v43  ;;  %v614_v30 = vmul.f32 %v3902_v52, %v2624_v15  ;;  %v1284_v63 = vmul.f32 %v1268_v61, %v660_v45  ;;  %v1332_v40 = vmul.f32 %v1316_v11, %v1204_v3  ;;  %v3907_v3 = vld [vmem:[#allocation59_spill] sm:$0xff] }
 0x152   :  { %vm1461_vm7 = vcmp.eq.s32.totalorder %v2967_v62, 1  ;;  %v1087_v23 = vmul.f32 %v1716_v58, %v3873_v38  ;;  %v2987_v47 = vadd.f32 1.0, %v888_v34  ;;  %1727 = vrcp.f32 %v1223_v35 }
 0x153   :  { %v2991_v13 = vmul.f32 %v3902_v52, %v2614_v8  ;;  %v1070_v25 = vmul.f32 %v3903_v24, %v2633_v4  ;;  %v492_v56 = vmul.f32 %v3904_v55, %v2971_v39  ;;  %v1514_v16 = vadd.f32 %v1498_v57, %v1497_v46  ;;  %vm1483_vm9 = vmand %vm1461_vm7, %vm2861_vm1 }
 0x154   :  { %v1122_v51 = vmul.f32 %v3905_v28, %v2664_v53  ;;  %v1158_v38 = vmul.f32 %v3903_v24, %v2635_v54  ;;  %v1036_v5 = vmul.f32 %v3906_v10, %v2987_v47  ;;  %v3003_v17 = vpop.eup %1719  ;;  %v3006_v44 = vmul.f32 %v2888_v42, %v1349_v33  ;;  %v3909_v42 = vld [vmem:[#allocation55_spill] sm:$0xff] }
 0x155   :  { %v663_v45 = vmul.f32 %v1714_v29, %v647_v49  ;;  %v1303_v61 = vmul.f32 %v559_v36, %v2906_v18  ;;  %v3010_v11 = vmul.f32 %v578_v59, %v2854_v50  ;;  %v3012_v57 = vpop.eup %1721  ;;  %v1348_v12 = vadd.f32 %v1332_v40, %v1284_v63  ;;  %v3910_v18 = vld [vmem:[#allocation54_spill] sm:$0xff]  ;;  %v3913_v40 = vld [vmem:[#allocation64_spill] sm:$0xff] }
 0x156   :  { %v1103_v35 = vmul.f32 %v1087_v23, %v2932_v2  ;;  %v630_v46 = vmul.f32 %v614_v30, %v3882_v1  ;;  %v347_v32 = vmul.f32 %v3908_v19, %v3907_v3  ;;  %v1222_v34 = vmul.f32 %v1070_v25, %v2991_v13  ;;  %v3914_v23 = vld [vmem:[#allocation72_spill] sm:$0xff]  ;;  %v3919_v59 = vld [vmem:[#allocation66_spill] sm:$0xff] }
 0x157   :  { %v581_v29 = vmul.f32 %v3909_v42, %v2622_v43  ;;  %v617_v49 = vmul.f32 %v3910_v18, %v2624_v15  ;;  %1729 = vrcp.f32 %v492_v56  ;;  %v3024_v33 = vmul.f32 %v1122_v51, %v2875_v20  ;;  %v3918_v42 = vld [vmem:[#allocation60_spill] sm:$0xff] }
 0x158   :  { %v3027_v36 = vmul.f32 %v1158_v38, %v3883_v0  ;;  %1731 = vrcp.f32 %v1036_v5  ;;  %v3029_v37 = vadd.f32 1.0, %v347_v32  ;;  %v1319_v52 = vmul.f32 %v1303_v61, %v2810_v22  ;;  %v3917_v32 = vld [vmem:[#allocation58_spill] sm:$0xff] }
 0x159   :  { %v542_v30 = vmul.f32 %v3003_v17, %v3882_v1  ;;  %v1086_v63 = vmul.f32 %v3012_v57, %v3883_v0  ;;  %v891_v24 = vmul.f32 %v3914_v23, %v3913_v40  ;;  %v1500_v56 = vsel %vm3035_vm8, %v3006_v44, 0.0  ;;  %v3915_v44 = vld [vmem:[#allocation71_spill] sm:$0xff]  ;;  %v3921_v40 = vld [vmem:[#allocation69_spill] sm:$0xff] }
 0x15a   :  { %v1364_v27 = vmul.f32 %v1718_v26, %v1348_v12  ;;  %v1255_v28 = vmul.f32 %v1103_v35, %v2932_v2  ;;  %v646_v51 = vsub.f32 %v3010_v11, %v630_v46  ;;  %v1207_v22 = vmul.f32 %v1716_v58, %v1191_v14  ;;  %v3916_v35 = vld [vmem:[#allocation76_spill] sm:$0xff]  ;;  %v3922_v23 = vld [vmem:[#allocation77_spill] sm:$0xff] }
 0x15b   :  { %v3051_v38 = vpop.eup %1723  ;;  %v3054_v1 = vmul.f32 %v581_v29, %v2896_v41  ;;  %v3057_v0 = vmul.f32 %v617_v49, %v3890_v7  ;;  %v3059_v5 = vadd.f32 1.0, %v891_v24  ;;  %v1190_v26 = vsub.f32 %v3024_v33, %v3027_v36 }
 0x15c   :  { %v3061_v61 = vpop.eup %1725  ;;  %1733 = vrcp.f32 %v1222_v34  ;;  %v529_v2 = vmul.f32 %v3910_v18, %v2614_v8  ;;  %v495_v58 = vmul.f32 %v3915_v44, %v3029_v37  ;;  %v1335_v14 = vmul.f32 %v1319_v52, %v1207_v22 }
 0x15d   :  { %v558_v11 = vmul.f32 %v542_v30, %v2991_v13  ;;  %v1102_v12 = vmul.f32 %v1086_v63, %v1070_v25  ;;  %v1039_v46 = vmul.f32 %v3916_v35, %v3059_v5  ;;  %v1499_v3 = vsel %vm1483_vm9, %v1364_v27, 0.0  ;;  %v3920_v30 = vld [vmem:[#allocation63_spill] sm:$0xff] }
 0x15e   :  { %v1271_v19 = vmul.f32 %v1255_v28, %v2774_v21  ;;  %v1073_v34 = vmul.f32 %v3917_v32, %v2633_v4  ;;  %v1125_v29 = vmul.f32 %v3918_v42, %v2664_v53  ;;  %v1515_v18 = vadd.f32 %v1514_v16, %v1499_v3 }
 0x15f   :  { %v545_v62 = vmul.f32 %v3051_v38, %v3890_v7  ;;  %v649_v49 = vsub.f32 %v3054_v1, %v3057_v0  ;;  %v1089_v33 = vmul.f32 %v3061_v61, %v3892_v9  ;;  %v1728_v36 = vpop.eup %1727  ;;  %v1161_v21 = vmul.f32 %v3917_v32, %v2635_v54  ;;  %v3923_v32 = vld [vmem:[#allocation68_spill] sm:$0xff] }
 0x160   :  { %v580_v52 = vmul.f32 %v3919_v59, %v2622_v43  ;;  %v616_v63 = vmul.f32 %v3920_v30, %v2624_v15  ;;  %1735 = vrcp.f32 %v495_v58  ;;  %v1254_v16 = vmul.f32 %v1102_v12, %v1070_v25  ;;  %v3924_v25 = vld [vmem:[#allocation74_spill] sm:$0xff] }
 0x161   :  { %v1302_v7 = vmul.f32 %v558_v11, %v2991_v13  ;;  %1737 = vrcp.f32 %v1039_v46  ;;  %v346_v24 = vmul.f32 %v3922_v23, %v3921_v40  ;;  %v1287_v27 = vmul.f32 %v1271_v19, %v663_v45  ;;  %v3925_v12 = vld [vmem:[#allocation82_spill] sm:$0xff] }
 0x162   :  { %v1141_v28 = vmul.f32 %v1125_v29, %v2914_v48  ;;  %v1225_v22 = vmul.f32 %v1073_v34, %v529_v2  ;;  %v3099_v1 = vmul.f32 %v3920_v30, %v2614_v8  ;;  %v561_v0 = vmul.f32 %v545_v62, %v529_v2 }
 0x163   :  { %v1105_v3 = vmul.f32 %v1089_v33, %v1073_v34  ;;  %v1072_v58 = vmul.f32 %v3923_v32, %v2633_v4  ;;  %v890_v13 = vmul.f32 %v3925_v12, %v3924_v25  ;;  %v662_v46 = vmul.f32 %v3003_v17, %v646_v51  ;;  %v3123_v17 = vpop.permute.xlu0 %1424  ;;  %v3929_v25 = vld [vmem:[#allocation78_spill] sm:$0xff]  ;;  %v3930_v12 = vld [vmem:[#allocation87_spill] sm:$0xff] }
 0x164   :  { %v3105_v11 = vpop.eup %1729  ;;  %v3108_v45 = vadd.f32 %v1515_v18, %v1500_v56  ;;  %v1177_v19 = vmul.f32 %v1161_v21, %v3892_v9  ;;  %v3112_v42 = vmul.f32 %v580_v52, %v2971_v39  ;;  %v1270_v62 = vmul.f32 %v1254_v16, %v2854_v50  ;;  %v3926_v56 = vld [vmem:[#allocation70_spill] sm:$0xff]  ;;  %v3131_v21 = vpop.permute.xlu1 %1427 }
 0x165   :  { %v3114_v29 = vpop.eup %1731  ;;  %v1318_v33 = vmul.f32 %v1302_v7, %v2875_v20  ;;  %v3119_v59 = vmul.f32 %v616_v63, %v3904_v55  ;;  %v3121_v30 = vadd.f32 1.0, %v346_v24  ;;  %v1351_v40 = vadd.f32 %v1335_v14, %v1287_v27 }
 0x166   :  { %v1124_v9 = vmul.f32 %v3926_v56, %v2664_v53  ;;  %v1160_v51 = vmul.f32 %v3923_v32, %v2635_v54  ;;  %v3129_v18 = vadd.f32 1.0, %v890_v13  ;;  %v1206_v50 = vmul.f32 %v3012_v57, %v1190_v26  ;;  %v3927_v26 = vld [vmem:[#allocation81_spill] sm:$0xff] }
 0x167   :  { %v1257_v20 = vmul.f32 %v1105_v3, %v1073_v34  ;;  %v1305_v52 = vmul.f32 %v561_v0, %v529_v2  ;;  %v1224_v63 = vmul.f32 %v1072_v58, %v3099_v1  ;;  %v1193_v16 = vsub.f32 %v1141_v28, %v1177_v19 }
 0x168   :  { %1739 = vrcp.f32 %v1225_v22  ;;  %v544_v14 = vmul.f32 %v3105_v11, %v3904_v55  ;;  %v1088_v7 = vmul.f32 %v3114_v29, %v3906_v10  ;;  %v1286_v24 = vmul.f32 %v1270_v62, %v662_v46  ;;  %v3928_v22 = vld [vmem:[#allocation85_spill] sm:$0xff] }
 0x169   :  { %v1734_v23 = vpop.eup %1733  ;;  %v1334_v27 = vmul.f32 %v1318_v33, %v1206_v50  ;;  %vm1463_vm10 = vcmp.eq.s32.totalorder %v3123_v17, 1  ;;  %v648_v57 = vsub.f32 %v3112_v42, %v3119_v59  ;;  %v494_v2 = vmul.f32 %v3927_v26, %v3121_v30  ;;  %v3931_v42 = vld [vmem:[#allocation73_spill] sm:$0xff] }
 0x16a   :  { %v3144_v34 = vmul.f32 %v1728_v36, %v1351_v40  ;;  %v1140_v28 = vmul.f32 %v1124_v9, %v2987_v47  ;;  %v1176_v55 = vmul.f32 %v1160_v51, %v3906_v10  ;;  %v1038_v0 = vmul.f32 %v3928_v22, %v3129_v18  ;;  %v3934_v51 = vld [vmem:[#allocation80_spill] sm:$0xff]  ;;  %vm1485_vm13 = vmand %vm1463_vm10, %vm2861_vm1 }
 0x16b   :  { %v1273_v3 = vmul.f32 %v1257_v20, %v2896_v41  ;;  %v1321_v32 = vmul.f32 %v1305_v52, %v2914_v48  ;;  %1741 = vrcp.f32 %v1224_v63  ;;  %v349_v13 = vmul.f32 %v3930_v12, %v3929_v25  ;;  %v3161_v41 = vpop.permute.xlu1 %1433  ;;  %v3932_v48 = vld [vmem:[#allocation84_spill] sm:$0xff]  ;;  %v3935_v52 = vld [vmem:[#allocation79_spill] sm:$0xff] }
 0x16c   :  { %v665_v46 = vmul.f32 %v3051_v38, %v649_v49  ;;  %v560_v36 = vmul.f32 %v544_v14, %v3099_v1  ;;  %v1104_v19 = vmul.f32 %v1088_v7, %v1072_v58  ;;  %v531_v62 = vmul.f32 %v3931_v42, %v2614_v8  ;;  %v3933_v38 = vld [vmem:[#allocation75_spill] sm:$0xff] }
 0x16d   :  { %v3158_v10 = vpop.eup %1735  ;;  %v1350_v33 = vadd.f32 %v1334_v27, %v1286_v24  ;;  %v1209_v59 = vmul.f32 %v3061_v61, %v1193_v16  ;;  %1743 = vrcp.f32 %v494_v2  ;;  %v893_v40 = vmul.f32 %v2414_v6, %v3932_v48 }
 0x16e   :  { %v3165_v56 = vpop.eup %1737  ;;  %vm1464_vm11 = vcmp.eq.s32.totalorder %v3131_v21, 1  ;;  %v583_v49 = vmul.f32 %v3933_v38, %v2622_v43  ;;  %v619_v9 = vmul.f32 %v3931_v42, %v2624_v15  ;;  %v1127_v50 = vmul.f32 %v3934_v51, %v2664_v53 }
 0x16f   :  { %1745 = vrcp.f32 %v1038_v0  ;;  %v1289_v61 = vmul.f32 %v1273_v3, %v665_v46  ;;  %v1337_v20 = vmul.f32 %v1321_v32, %v1209_v59  ;;  %v1163_v63 = vmul.f32 %v3935_v52, %v2635_v54  ;;  %vm1486_vm14 = vmand %vm1464_vm11, %vm2861_vm1 }
 0x170   :  { %v3176_v6 = vadd.f32 1.0, %v349_v13  ;;  %vm1466_vm12 = vcmp.eq.s32.totalorder %v3161_v41, 1  ;;  %v1256_v16 = vmul.f32 %v1104_v19, %v1072_v58  ;;  %v1304_v14 = vmul.f32 %v560_v36, %v3099_v1  ;;  %v3936_v1 = vld [vmem:[#allocation86_spill] sm:$0xff] }
 0x171   :  { %v1075_v7 = vmul.f32 %v3935_v52, %v2633_v4  ;;  %v3182_v24 = vadd.f32 1.0, %v893_v40  ;;  %v1366_v27 = vmul.f32 %v1734_v23, %v1350_v33  ;;  %v1192_v2 = vsub.f32 %v1140_v28, %v1176_v55  ;;  %v3937_v23 = vld [vmem:[#allocation83_spill] sm:$0xff]  ;;  %v3938_v55 = vld [vmem:[#allocation90_spill] sm:$0xff]  ;;  %v3941_v52 = vld [vmem:[#allocation89_spill] sm:$0xff] }
 0x172   :  { %v547_v0 = vmul.f32 %v3158_v10, %v3915_v44  ;;  %v1091_v3 = vmul.f32 %v3165_v56, %v3916_v35  ;;  %v599_v32 = vmul.f32 %v583_v49, %v3029_v37  ;;  %v635_v25 = vmul.f32 %v619_v9, %v3915_v44  ;;  %v3939_v33 = vld [vmem:[#allocation95_spill] sm:$0xff]  ;;  %vm3240_vm0 = vmand %vm1466_vm12, %vm2861_vm1 }
 0x173   :  { %v1143_v58 = vmul.f32 %v1127_v50, %v3059_v5  ;;  %v582_v12 = vmul.f32 %v3936_v1, %v2622_v43  ;;  %v1353_v13 = vadd.f32 %v1337_v20, %v1289_v61  ;;  %v1179_v46 = vmul.f32 %v1163_v63, %v3916_v35  ;;  %v1431_v50 = vpop.permute.xlu0 %1430  ;;  %v3942_v63 = vld [vmem:[#allocation96_spill] sm:$0xff] }
 0x174   :  { %v618_v28 = vmul.f32 %v3937_v23, %v2624_v15  ;;  %v497_v36 = vmul.f32 %v3938_v55, %v3176_v6  ;;  %v1272_v44 = vmul.f32 %v1256_v16, %v2971_v39  ;;  %v1320_v19 = vmul.f32 %v1304_v14, %v2987_v47 }
 0x175   :  { %v1227_v42 = vmul.f32 %v1075_v7, %v531_v62  ;;  %v1041_v59 = vmul.f32 %v3939_v33, %v3182_v24  ;;  %v1740_v35 = vpop.eup %1739  ;;  %v1501_v48 = vsel %vm1485_vm13, %v1366_v27, 0.0  ;;  %v664_v40 = vmul.f32 %v3105_v11, %v648_v57  ;;  %v3940_v11 = vld [vmem:[#allocation91_spill] sm:$0xff] }
 0x176   :  { %v563_v38 = vmul.f32 %v547_v0, %v531_v62  ;;  %v1107_v49 = vmul.f32 %v1091_v3, %v1075_v7  ;;  %v1517_v9 = vadd.f32 %v3108_v45, %v1501_v48  ;;  %v1208_v51 = vmul.f32 %v3114_v29, %v1192_v2  ;;  %v3943_v2 = vld [vmem:[#allocation88_spill] sm:$0xff]  ;;  %v3944_v3 = vld [vmem:[#allocation93_spill] sm:$0xff] }
 0x177   :  { %v3211_v17 = vmul.f32 %v3937_v23, %v2614_v8  ;;  %v3214_v39 = vmul.f32 %v582_v12, %v3121_v30  ;;  %v3216_v47 = vmul.f32 %v1740_v35, %v1353_v13  ;;  %v3219_v61 = vmul.f32 %v618_v28, %v3927_v26  ;;  %v3947_v35 = vld [vmem:[#allocation94_spill] sm:$0xff] }
 0x178   :  { %v1126_v57 = vmul.f32 %v3940_v11, %v2664_v53  ;;  %1747 = vrcp.f32 %v497_v36  ;;  %v1742_v45 = vpop.eup %1741  ;;  %v1288_v20 = vmul.f32 %v1272_v44, %v664_v40  ;;  %v1336_v29 = vmul.f32 %v1320_v19, %v1208_v51  ;;  %v3948_v40 = vld [vmem:[#allocation92_spill] sm:$0xff] }
 0x179   :  { %1749 = vrcp.f32 %v1041_v59  ;;  %v348_v16 = vmul.f32 %v3942_v63, %v3941_v52  ;;  %v1259_v14 = vmul.f32 %v1107_v49, %v1075_v7  ;;  %v1307_v27 = vmul.f32 %v563_v38, %v531_v62  ;;  %v3952_v52 = vld [vmem:[#allocation104_spill] sm:$0xff] }
 0x17a   :  { %v1074_v0 = vmul.f32 %v3943_v2, %v2633_v4  ;;  %v892_v1 = vmul.f32 %v2454_v31, %v3944_v3  ;;  %v1744_v12 = vpop.eup %1743  ;;  %v1502_v13 = vsel %vm1486_vm14, %v3144_v34, 0.0  ;;  %vm1465_vm15 = vcmp.eq.s32.totalorder %v1431_v50, 1  ;;  %v3953_v3 = vld [vmem:[#allocation98_spill] sm:$0xff] }
 0x17b   :  { %v651_v23 = vsub.f32 %v599_v32, %v635_v25  ;;  %v1195_v28 = vsub.f32 %v1143_v58, %v1179_v46  ;;  %v1518_v62 = vadd.f32 %v1517_v9, %v1502_v13  ;;  %1751 = vrcp.f32 %v1227_v42  ;;  %v3949_v9 = vld [vmem:[#allocation99_spill] sm:$0xff]  ;;  %vm1487_vm3 = vmand %vm1465_vm15, %vm2861_vm1 }
 0x17c   :  { %v3234_v36 = vpop.eup %1745  ;;  %v650_v31 = vsub.f32 %v3214_v39, %v3219_v61  ;;  %v1162_v34 = vmul.f32 %v3943_v2, %v2635_v54  ;;  %v1504_v7 = vsel %vm3240_vm0, %v3216_v47, 0.0  ;;  %v1352_v32 = vadd.f32 %v1336_v29, %v1288_v20  ;;  %v3950_v39 = vld [vmem:[#allocation97_spill] sm:$0xff] }
 0x17d   :  { %v1142_v25 = vmul.f32 %v1126_v57, %v3129_v18  ;;  %v3252_v41 = vadd.f32 1.0, %v348_v16  ;;  %v1275_v58 = vmul.f32 %v1259_v14, %v3029_v37  ;;  %v1323_v46 = vmul.f32 %v1307_v27, %v3059_v5  ;;  %v1440_v5 = vpop.permute.xlu1 %1439  ;;  %v3951_v57 = vld [vmem:[#allocation100_spill] sm:$0xff] }
 0x17e   :  { %v1226_v44 = vmul.f32 %v1074_v0, %v3211_v17  ;;  %v3257_v19 = vadd.f32 1.0, %v892_v1  ;;  %v546_v42 = vmul.f32 %v1744_v12, %v3927_v26  ;;  %v1090_v59 = vmul.f32 %v3234_v36, %v3928_v22  ;;  %v3954_v1 = vld [vmem:[#allocation106_spill] sm:$0xff] }
 0x17f   :  { %v585_v48 = vmul.f32 %v3947_v35, %v2622_v43  ;;  %v621_v38 = vmul.f32 %v3948_v40, %v2624_v15  ;;  %v667_v49 = vmul.f32 %v3158_v10, %v651_v23  ;;  %v1211_v37 = vmul.f32 %v3165_v56, %v1195_v28 }
 0x180   :  { %v1129_v51 = vmul.f32 %v3949_v9, %v2664_v53  ;;  %v1165_v26 = vmul.f32 %v3950_v39, %v2635_v54  ;;  %v1368_v47 = vmul.f32 %v1742_v45, %v1352_v32  ;;  %v1178_v61 = vmul.f32 %v1162_v34, %v3928_v22  ;;  %v3955_v34 = vld [vmem:[#allocation102_spill] sm:$0xff]  ;;  %v3956_v32 = vld [vmem:[#allocation112_spill] sm:$0xff] }
 0x181   :  { %v3275_v11 = vmul.f32 %v3948_v40, %v2614_v8  ;;  %v496_v20 = vmul.f32 %v3951_v57, %v3252_v41  ;;  %v1291_v10 = vmul.f32 %v1275_v58, %v667_v49  ;;  %v1339_v29 = vmul.f32 %v1323_v46, %v1211_v37 }
 0x182   :  { %v3281_v56 = vmul.f32 %v3950_v39, %v2633_v4  ;;  %v1040_v63 = vmul.f32 %v3952_v52, %v3257_v19  ;;  %vm1468_vm2 = vcmp.eq.s32.totalorder %v1440_v5, 1  ;;  %v562_v45 = vmul.f32 %v546_v42, %v3211_v17  ;;  %v3960_v39 = vld [vmem:[#allocation115_spill] sm:$0xff] }
 0x183   :  { %v1106_v22 = vmul.f32 %v1090_v59, %v1074_v0  ;;  %v3287_v16 = vmul.f32 %v585_v48, %v3176_v6  ;;  %v3290_v14 = vmul.f32 %v621_v38, %v3938_v55  ;;  %1753 = vrcp.f32 %v1226_v44  ;;  %v3957_v38 = vld [vmem:[#allocation103_spill] sm:$0xff]  ;;  %vm3362_vm4 = vmand %vm1468_vm2, %vm2861_vm1 }
 0x184   :  { %v3296_v27 = vmul.f32 %v1129_v51, %v3182_v24  ;;  %v3299_v2 = vmul.f32 %v1165_v26, %v3939_v33  ;;  %v351_v13 = vmul.f32 %v3954_v1, %v3953_v3  ;;  %v1503_v28 = vsel %vm1487_vm3, %v1368_v47, 0.0 }
 0x185   :  { %v3303_v23 = vpop.eup %1747  ;;  %v1194_v21 = vsub.f32 %v1142_v25, %v1178_v61  ;;  %1755 = vrcp.f32 %v496_v20  ;;  %v895_v58 = vmul.f32 %v3956_v32, %v3955_v34  ;;  %v1519_v46 = vadd.f32 %v1518_v62, %v1503_v28  ;;  %v3958_v62 = vld [vmem:[#allocation101_spill] sm:$0xff] }
 0x186   :  { %v3307_v50 = vpop.eup %1749  ;;  %v1355_v44 = vadd.f32 %v1339_v29, %v1291_v10  ;;  %v1229_v42 = vmul.f32 %v3281_v56, %v3275_v11  ;;  %1757 = vrcp.f32 %v1040_v63  ;;  %v666_v59 = vmul.f32 %v1744_v12, %v650_v31  ;;  %v3959_v31 = vld [vmem:[#allocation107_spill] sm:$0xff]  ;;  %v3961_v63 = vld [vmem:[#allocation109_spill] sm:$0xff] }
 0x187   :  { %v1258_v35 = vmul.f32 %v1106_v22, %v1074_v0  ;;  %v1306_v48 = vmul.f32 %v562_v45, %v3211_v17  ;;  %v653_v40 = vsub.f32 %v3287_v16, %v3290_v14  ;;  %v1197_v25 = vsub.f32 %v3296_v27, %v3299_v2  ;;  %v3341_v22 = vpop.permute.xlu0 %1436  ;;  %v3979_v27 = vld [vmem:[#allocation132_spill] sm:$0xff] }
 0x188   :  { %v584_v49 = vmul.f32 %v3957_v38, %v2622_v43  ;;  %v620_v37 = vmul.f32 %v3958_v62, %v2624_v15  ;;  %v3320_v9 = vadd.f32 1.0, %v351_v13  ;;  %v1752_v51 = vpop.eup %1751  ;;  %v549_v0 = vmul.f32 %v3303_v23, %v3938_v55  ;;  %v3965_v13 = vld [vmem:[#allocation113_spill] sm:$0xff] }
 0x189   :  { %v1093_v17 = vmul.f32 %v3307_v50, %v3939_v33  ;;  %v3326_v12 = vadd.f32 1.0, %v895_v58  ;;  %v350_v26 = vmul.f32 %v3960_v39, %v3959_v31  ;;  %v3330_v47 = vmul.f32 %v1752_v51, %v1355_v44  ;;  %v3962_v33 = vld [vmem:[#allocation120_spill] sm:$0xff] }
 0x18a   :  { %v1210_v61 = vmul.f32 %v3234_v36, %v1194_v21  ;;  %v3333_v20 = vadd.f32 %v1519_v46, %v1504_v7  ;;  %1759 = vrcp.f32 %v1229_v42  ;;  %v1274_v10 = vmul.f32 %v1258_v35, %v3121_v30  ;;  %v3963_v36 = vld [vmem:[#allocation110_spill] sm:$0xff]  ;;  %v3964_v30 = vld [vmem:[#allocation108_spill] sm:$0xff]  ;;  %v3966_v21 = vld [vmem:[#allocation117_spill] sm:$0xff] }
 0x18b   :  { %v1322_v29 = vmul.f32 %v1306_v48, %v3129_v18  ;;  %v3337_v55 = vadd.f32 1.0, %v350_v26  ;;  %v894_v45 = vmul.f32 %v3962_v33, %v3961_v63  ;;  %v3344_v16 = vmul.f32 %v584_v49, %v3252_v41  ;;  %v3969_v46 = vld [vmem:[#allocation105_spill] sm:$0xff]  ;;  %v3973_v63 = vld [vmem:[#allocation116_spill] sm:$0xff] }
 0x18c   :  { %v3347_v14 = vmul.f32 %v620_v37, %v3951_v57  ;;  %v1128_v7 = vmul.f32 %v3963_v36, %v2664_v53  ;;  %v499_v3 = vmul.f32 %v3964_v30, %v3320_v9  ;;  %v565_v18 = vmul.f32 %v549_v0, %v3275_v11  ;;  %v3970_v37 = vld [vmem:[#allocation123_spill] sm:$0xff] }
 0x18d   :  { %v1109_v1 = vmul.f32 %v1093_v17, %v3281_v56  ;;  %v1043_v28 = vmul.f32 %v3965_v13, %v3326_v12  ;;  %v498_v34 = vmul.f32 %v3966_v21, %v3337_v55  ;;  %v3368_v58 = vmul.f32 %v3958_v62, %v2614_v8 }
 0x18e   :  { %v3372_v44 = vmul.f32 %v3969_v46, %v2633_v4  ;;  %v1164_v42 = vmul.f32 %v3969_v46, %v2635_v54  ;;  %v3376_v35 = vadd.f32 1.0, %v894_v45  ;;  %v1506_v5 = vsel %vm3362_vm4, %v3330_v47, 0.0  ;;  %v3976_v46 = vld [vmem:[#allocation128_spill] sm:$0xff] }
 0x18f   :  { %v1290_v48 = vmul.f32 %v1274_v10, %v666_v59  ;;  %v1338_v38 = vmul.f32 %v1322_v29, %v1210_v61  ;;  %vm1467_vm5 = vcmp.eq.s32.totalorder %v3341_v22, 1  ;;  %1761 = vrcp.f32 %v498_v34  ;;  %v3971_v59 = vld [vmem:[#allocation114_spill] sm:$0xff]  ;;  %v3972_v61 = vld [vmem:[#allocation111_spill] sm:$0xff] }
 0x190   :  { %v652_v49 = vsub.f32 %v3344_v16, %v3347_v14  ;;  %v3385_v62 = vmul.f32 %v1128_v7, %v3257_v19  ;;  %1763 = vrcp.f32 %v499_v3  ;;  %v1042_v51 = vmul.f32 %v3970_v37, %v3376_v35  ;;  %v1754_v0 = vpop.eup %1753  ;;  %v3974_v7 = vld [vmem:[#allocation121_spill] sm:$0xff]  ;;  %vm1489_vm7 = vmand %vm1467_vm5, %vm2861_vm1 }
 0x191   :  { %v1261_v17 = vmul.f32 %v1109_v1, %v3281_v56  ;;  %v1309_v31 = vmul.f32 %v565_v18, %v3275_v11  ;;  %v587_v39 = vmul.f32 %v3971_v59, %v2622_v43  ;;  %1765 = vrcp.f32 %v1043_v28  ;;  %v3975_v1 = vld [vmem:[#allocation119_spill] sm:$0xff]  ;;  %v3977_v59 = vld [vmem:[#allocation118_spill] sm:$0xff] }
 0x192   :  { %v1756_v26 = vpop.eup %1755  ;;  %v3395_v10 = vmul.f32 %v3972_v61, %v2614_v8  ;;  %v623_v29 = vmul.f32 %v3972_v61, %v2624_v15  ;;  %v3401_v33 = vmul.f32 %v3973_v63, %v2633_v4  ;;  %1767 = vrcp.f32 %v1042_v51 }
 0x193   :  { %v3403_v56 = vpop.eup %1757  ;;  %v1354_v11 = vadd.f32 %v1338_v38, %v1290_v48  ;;  %v3406_v45 = vmul.f32 %v1164_v42, %v3952_v52  ;;  %v1228_v36 = vmul.f32 %v3372_v44, %v3368_v58  ;;  %v337_v3 = vmul.f32 %v3974_v7, %v3974_v7  ;;  %v3425_v7 = vpop.permute.xlu1 %1445 }
 0x194   :  { %v669_v18 = vmul.f32 %v3303_v23, %v653_v40  ;;  %v1131_v28 = vmul.f32 %v3975_v1, %v2664_v53  ;;  %v1167_v34 = vmul.f32 %v3973_v63, %v2635_v54  ;;  %v881_v48 = vmul.f32 %v3976_v46, %v3976_v46 }
 0x195   :  { %v1277_v42 = vmul.f32 %v1261_v17, %v3176_v6  ;;  %v1325_v38 = vmul.f32 %v1309_v31, %v3182_v24  ;;  %v3422_v51 = vmul.f32 %v587_v39, %v3320_v9  ;;  %v353_v61 = vmul.f32 %v337_v3, %v3977_v59  ;;  %v3978_v3 = vld [vmem:[#allocation124_spill] sm:$0xff] }
 0x196   :  { %v548_v23 = vmul.f32 %v1756_v26, %v3951_v57  ;;  %v1092_v40 = vmul.f32 %v3403_v56, %v3952_v52  ;;  %v3431_v63 = vmul.f32 %v623_v29, %v3964_v30  ;;  %v1231_v6 = vmul.f32 %v3401_v33, %v3395_v10 }
 0x197   :  { %v1760_v17 = vpop.eup %1759  ;;  %v1370_v24 = vmul.f32 %v1754_v0, %v1354_v11  ;;  %v1213_v31 = vmul.f32 %v3307_v50, %v1197_v25  ;;  %v3439_v39 = vadd.f32 1.0, %v353_v61  ;;  %v897_v57 = vmul.f32 %v881_v48, %v3978_v3 }
 0x198   :  { %v1196_v52 = vsub.f32 %v3385_v62, %v3406_v45  ;;  %1769 = vrcp.f32 %v1228_v36  ;;  %v3445_v29 = vmul.f32 %v1131_v28, %v3326_v12  ;;  %v3448_v1 = vmul.f32 %v1167_v34, %v3965_v13  ;;  %v3981_v34 = vld [vmem:[#allocation19_spill] sm:$0xff] }
 0x199   :  { %v1293_v0 = vmul.f32 %v1277_v42, %v669_v18  ;;  %v1341_v11 = vmul.f32 %v1325_v38, %v1213_v31  ;;  %vm1470_vm6 = vcmp.eq.s32.totalorder %v3425_v7, 1  ;;  %v501_v2 = vmul.f32 %v3979_v27, %v3439_v39  ;;  %v3980_v18 = vld [vmem:[#allocation122_spill] sm:$0xff] }
 0x19a   :  { %v3453_v50 = vadd.f32 1.0, %v897_v57  ;;  %v564_v25 = vmul.f32 %v548_v23, %v3368_v58  ;;  %v1108_v62 = vmul.f32 %v1092_v40, %v3372_v44  ;;  %v655_v45 = vsub.f32 %v3422_v51, %v3431_v63  ;;  %v3982_v51 = vld [vmem:[#allocation133_spill] sm:$0xff]  ;;  %vm3525_vm8 = vmand %vm1470_vm6, %vm2861_vm1 }
 0x19b   :  { %1771 = vrcp.f32 %v1231_v6  ;;  %v1505_v36 = vsel %vm1489_vm7, %v1370_v24, 0.0  ;;  %v622_v28 = vmul.f32 %v3980_v18, %v2624_v15  ;;  %v1199_v42 = vsub.f32 %v3445_v29, %v3448_v1  ;;  %v3983_v40 = vld [vmem:[#allocation125_spill] sm:$0xff]  ;;  %v3984_v6 = vld [vmem:[#allocation126_spill] sm:$0xff] }
 0x19c   :  { %1773 = vrcp.f32 %v501_v2  ;;  %v1045_v46 = vmul.f32 %v3981_v34, %v3453_v50  ;;  %v3467_v48 = vpop.eup %1761  ;;  %v1521_v22 = vadd.f32 %v3333_v20, %v1505_v36  ;;  %v534_v38 = vmul.f32 %v3980_v18, %v2614_v8  ;;  %v3985_v2 = vld [vmem:[#allocation130_spill] sm:$0xff] }
 0x19d   :  { %v336_v59 = vmul.f32 %v3982_v51, %v3982_v51  ;;  %v1764_v61 = vpop.eup %1763  ;;  %v1357_v23 = vadd.f32 %v1341_v11, %v1293_v0  ;;  %v586_v63 = vmul.f32 %v3983_v40, %v2622_v43  ;;  %v1078_v24 = vmul.f32 %v3984_v6, %v2633_v4  ;;  %v3987_v40 = vld [vmem:[#allocation138_spill] sm:$0xff] }
 0x19e   :  { %1775 = vrcp.f32 %v1045_v46  ;;  %v1766_v31 = vpop.eup %1765  ;;  %v668_v20 = vmul.f32 %v1756_v26, %v652_v49  ;;  %v1260_v3 = vmul.f32 %v1108_v62, %v3372_v44  ;;  %v1308_v57 = vmul.f32 %v564_v25, %v3368_v58  ;;  %v3986_v46 = vld [vmem:[#allocation127_spill] sm:$0xff] }
 0x19f   :  { %v352_v36 = vmul.f32 %v336_v59, %v3985_v2  ;;  %v3486_v18 = vpop.eup %1767  ;;  %v550_v0 = vmul.f32 %v3467_v48, %v3966_v21  ;;  %v3491_v11 = vmul.f32 %v622_v28, %v3966_v21  ;;  %v1130_v51 = vmul.f32 %v3986_v46, %v2664_v53  ;;  %v3988_v62 = vld [vmem:[#allocation135_spill] sm:$0xff]  ;;  %v3989_v46 = vld [vmem:[#allocation137_spill] sm:$0xff] }
 0x1a0   :  { %v880_v16 = vmul.f32 %v3987_v40, %v3987_v40  ;;  %v551_v14 = vmul.f32 %v1764_v61, %v3964_v30  ;;  %v1094_v58 = vmul.f32 %v3486_v18, %v3970_v37  ;;  %v1166_v44 = vmul.f32 %v3984_v6, %v2635_v54 }
 0x1a1   :  { %v3502_v49 = vadd.f32 1.0, %v352_v36  ;;  %v3504_v26 = vmul.f32 %v1760_v17, %v1357_v23  ;;  %v602_v21 = vmul.f32 %v586_v63, %v3337_v55  ;;  %v1230_v25 = vmul.f32 %v1078_v24, %v534_v38 }
 0x1a2   :  { %v896_v28 = vmul.f32 %v880_v16, %v3988_v62  ;;  %v1276_v59 = vmul.f32 %v1260_v3, %v3252_v41  ;;  %v1324_v2 = vmul.f32 %v1308_v57, %v3257_v19  ;;  %v1095_v30 = vmul.f32 %v1766_v31, %v3965_v13  ;;  %v1443_v13 = vpop.permute.xlu0 %1442  ;;  %v3992_v57 = vld [vmem:[#allocation16_spill] sm:$0xff]  ;;  %v3994_v62 = vld [vmem:[#allocation134_spill] sm:$0xff] }
 0x1a3   :  { %v500_v40 = vmul.f32 %v3989_v46, %v3502_v49  ;;  %v3517_v17 = vadd.f32 %v1521_v22, %v1506_v5  ;;  %v566_v23 = vmul.f32 %v550_v0, %v534_v38  ;;  %v1110_v63 = vmul.f32 %v1094_v58, %v1078_v24 }
 0x1a4   :  { %v3519_v6 = vadd.f32 1.0, %v896_v28  ;;  %v1212_v19 = vmul.f32 %v3403_v56, %v1196_v52  ;;  %v567_v32 = vmul.f32 %v551_v14, %v3395_v10  ;;  %v1182_v47 = vmul.f32 %v1166_v44, %v3970_v37 }
 0x1a5   :  { %1777 = vrcp.f32 %v500_v40  ;;  %v1770_v5 = vpop.eup %1769  ;;  %v1508_v22 = vsel %vm3525_vm8, %v3504_v26, 0.0  ;;  %v654_v3 = vsub.f32 %v602_v21, %v3491_v11  ;;  %v1146_v7 = vmul.f32 %v1130_v51, %v3376_v35  ;;  %v3993_v51 = vld [vmem:[#allocation129_spill] sm:$0xff] }
 0x1a6   :  { %v1044_v36 = vmul.f32 %v3992_v57, %v3519_v6  ;;  %v1292_v0 = vmul.f32 %v1276_v59, %v668_v20  ;;  %v1340_v56 = vmul.f32 %v1324_v2, %v1212_v19  ;;  %v1111_v52 = vmul.f32 %v1095_v30, %v3401_v33 }
 0x1a7   :  { %1779 = vrcp.f32 %v1230_v25  ;;  %vm1469_vm9 = vcmp.eq.s32.totalorder %v1443_v13, 1  ;;  %v671_v37 = vmul.f32 %v1764_v61, %v655_v45  ;;  %v1262_v14 = vmul.f32 %v1110_v63, %v1078_v24  ;;  %v3996_v24 = vld [vmem:[#allocation136_spill] sm:$0xff] }
 0x1a8   :  { %v3540_v16 = vpop.eup %1771  ;;  %v1310_v58 = vmul.f32 %v566_v23, %v534_v38  ;;  %1781 = vrcp.f32 %v1044_v36  ;;  %v1311_v11 = vmul.f32 %v567_v32, %v3395_v10  ;;  %v537_v21 = vmul.f32 %v3993_v51, %v2614_v8  ;;  %v3995_v38 = vld [vmem:[#allocation131_spill] sm:$0xff]  ;;  %vm1491_vm10 = vmand %vm1469_vm9, %vm2861_vm1 }
 0x1a9   :  { %v3542_v44 = vpop.eup %1773  ;;  %v625_v20 = vmul.f32 %v3993_v51, %v2624_v15  ;;  %v1081_v25 = vmul.f32 %v3994_v62, %v2633_v4  ;;  %v1198_v28 = vsub.f32 %v1146_v7, %v1182_v47  ;;  %v589_v61 = vmul.f32 %v3995_v38, %v2622_v43  ;;  %v3997_v23 = vld [vmem:[#allocation27_spill] sm:$0xff]  ;;  %v3998_v7 = vld [vmem:[#allocation8_spill] sm:$0xff] }
 0x1aa   :  { %v553_v45 = vmul.f32 %v3542_v44, %v3979_v27  ;;  %v1133_v59 = vmul.f32 %v3996_v24, %v2664_v53  ;;  %v1356_v2 = vadd.f32 %v1340_v56, %v1292_v0  ;;  %v1215_v30 = vmul.f32 %v1766_v31, %v1199_v42 }
 0x1ab   :  { %v1776_v10 = vpop.eup %1775  ;;  %v1263_v40 = vmul.f32 %v1111_v52, %v3401_v33  ;;  %v536_v63 = vmul.f32 %v3997_v23, %v2614_v8  ;;  %v1278_v19 = vmul.f32 %v1262_v14, %v3337_v55  ;;  %v1326_v32 = vmul.f32 %v1310_v58, %v3376_v35  ;;  %v3999_v52 = vld [vmem:[#allocation31_spill] sm:$0xff] }
 0x1ac   :  { %v1097_v47 = vmul.f32 %v1776_v10, %v3981_v34  ;;  %v1080_v36 = vmul.f32 %v3998_v7, %v2633_v4  ;;  %v1327_v0 = vmul.f32 %v1311_v11, %v3326_v12  ;;  %v641_v56 = vmul.f32 %v625_v20, %v3979_v27 }
 0x1ad   :  { %v1169_v29 = vmul.f32 %v3994_v62, %v2635_v54  ;;  %v1233_v33 = vmul.f32 %v1081_v25, %v537_v21  ;;  %v670_v1 = vmul.f32 %v3467_v48, %v654_v3  ;;  %v1214_v8 = vmul.f32 %v3486_v18, %v1198_v28  ;;  %v4000_v18 = vld [vmem:[#allocation22_spill] sm:$0xff] }
 0x1ae   :  { %v569_v55 = vmul.f32 %v553_v45, %v537_v21  ;;  %v1113_v42 = vmul.f32 %v1097_v47, %v1081_v25  ;;  %v1372_v35 = vmul.f32 %v1770_v5, %v1356_v2  ;;  %v1279_v31 = vmul.f32 %v1263_v40, %v3320_v9 }
 0x1af   :  { %v1132_v4 = vmul.f32 %v3999_v52, %v2664_v53  ;;  %v1168_v12 = vmul.f32 %v3998_v7, %v2635_v54  ;;  %v1294_v27 = vmul.f32 %v1278_v19, %v670_v1  ;;  %v1342_v14 = vmul.f32 %v1326_v32, %v1214_v8  ;;  %v1452_v7 = vpop.permute.xlu1 %1451 }
 0x1b0   :  { %v605_v58 = vmul.f32 %v589_v61, %v3439_v39  ;;  %v1232_v11 = vmul.f32 %v1080_v36, %v536_v63  ;;  %v1343_v51 = vmul.f32 %v1327_v0, %v1215_v30  ;;  %v1185_v48 = vmul.f32 %v1169_v29, %v3981_v34  ;;  %v1449_v61 = vpop.permute.xlu0 %1448 }
 0x1b1   :  { %v588_v3 = vmul.f32 %v4000_v18, %v2622_v43  ;;  %v624_v9 = vmul.f32 %v3997_v23, %v2624_v15  ;;  %v1149_v53 = vmul.f32 %v1133_v59, %v3453_v50  ;;  %1783 = vrcp.f32 %v1233_v33 }
 0x1b2   :  { %v1778_v5 = vpop.eup %1777  ;;  %v1265_v20 = vmul.f32 %v1113_v42, %v1081_v25  ;;  %v1313_v54 = vmul.f32 %v569_v55, %v537_v21  ;;  %v1295_v62 = vmul.f32 %v1279_v31, %v671_v37  ;;  %v1148_v34 = vmul.f32 %v1132_v4, %v3519_v6 }
 0x1b3   :  { %v552_v28 = vmul.f32 %v1778_v5, %v3989_v46  ;;  %v1184_v43 = vmul.f32 %v1168_v12, %v3992_v57  ;;  %v1507_v38 = vsel %vm1491_vm10, %v1372_v35, 0.0  ;;  %v1358_v15 = vadd.f32 %v1342_v14, %v1294_v27 }
 0x1b4   :  { %v1780_v45 = vpop.eup %1779  ;;  %v657_v24 = vsub.f32 %v605_v58, %v641_v56  ;;  %1785 = vrcp.f32 %v1232_v11  ;;  %v1523_v21 = vadd.f32 %v3517_v17, %v1507_v38  ;;  %v604_v13 = vmul.f32 %v588_v3, %v3502_v49  ;;  %v1455_v55 = vpop.permute.xlu0 %1454 }
 0x1b5   :  { %v1782_v59 = vpop.eup %1781  ;;  %v568_v25 = vmul.f32 %v552_v28, %v536_v63  ;;  %v640_v37 = vmul.f32 %v624_v9, %v3989_v46  ;;  %v1201_v2 = vsub.f32 %v1149_v53, %v1185_v48  ;;  %v1281_v30 = vmul.f32 %v1265_v20, %v3439_v39 }
 0x1b6   :  { %v1329_v40 = vmul.f32 %v1313_v54, %v3453_v50  ;;  %v1096_v23 = vmul.f32 %v1782_v59, %v3992_v57  ;;  %v1359_v19 = vadd.f32 %v1343_v51, %v1295_v62  ;;  %vm1471_vm11 = vcmp.eq.s32.totalorder %v1449_v61, 1 }
 0x1b7   :  { %v1200_v32 = vsub.f32 %v1148_v34, %v1184_v43  ;;  %v1312_v47 = vmul.f32 %v568_v25, %v536_v63  ;;  %v1374_v0 = vmul.f32 %v1780_v45, %v1358_v15  ;;  %v673_v17 = vmul.f32 %v3542_v44, %v657_v24  ;;  %vm1493_vm13 = vmand %vm1471_vm11, %vm2861_vm1 }
 0x1b8   :  { %v1217_v56 = vmul.f32 %v1776_v10, %v1201_v2  ;;  %v1112_v29 = vmul.f32 %v1096_v23, %v1080_v36  ;;  %v1524_v46 = vadd.f32 %v1523_v21, %v1508_v22  ;;  %v656_v39 = vsub.f32 %v604_v13, %v640_v37 }
 0x1b9   :  { %v1328_v50 = vmul.f32 %v1312_v47, %v3519_v6  ;;  %v1297_v33 = vmul.f32 %v1281_v30, %v673_v17  ;;  %v1216_v1 = vmul.f32 %v1782_v59, %v1200_v32  ;;  %v1375_v63 = vmul.f32 %v3540_v16, %v1359_v19 }
 0x1ba   :  { %v1345_v57 = vmul.f32 %v1329_v40, %v1217_v56  ;;  %v1264_v8 = vmul.f32 %v1112_v29, %v1080_v36  ;;  %vm1472_vm12 = vcmp.eq.s32.totalorder %v1452_v7, 1  ;;  %v1509_v44 = vsel %vm1493_vm13, %v1374_v0, 0.0  ;;  %v1458_v36 = vpop.permute.xlu1 %1457 }
 0x1bb   :  { %v672_v10 = vmul.f32 %v1778_v5, %v656_v39  ;;  %v1344_v26 = vmul.f32 %v1328_v50, %v1216_v1  ;;  %v1525_v22 = vadd.f32 %v1524_v46, %v1509_v44  ;;  %vm1494_vm14 = vmand %vm1472_vm12, %vm2861_vm1  ;;  %vm1473_vm15 = vcmp.eq.s32.totalorder %v1455_v55, 1  ;;  %v1513_v5 = vld [vmem:[#allocation2] sm:$0x1] }
 0x1bc   :  { %v1280_v41 = vmul.f32 %v1264_v8, %v3502_v49  ;;  %v1361_v42 = vadd.f32 %v1345_v57, %v1297_v33  ;;  %v1510_v16 = vsel %vm1494_vm14, %v1375_v63, 0.0  ;;  %vm1474_vm0 = vcmp.eq.s32.totalorder %v1458_v36, 1  ;;  %vm1495_vm2 = vmand %vm1473_vm15, %vm2861_vm1 }
 0x1bd   :  { %v1526_v4 = vadd.f32 %v1525_v22, %v1510_v16  ;;  %vm1496_vm3 = vmand %vm1474_vm0, %vm2861_vm1 }
 0x1be   :  { %v1296_v6 = vmul.f32 %v1280_v41, %v672_v10  ;;  %v1784_v35 = vpop.eup %1783 }
 0x1bf   :  { %v1377_v12 = vmul.f32 %v1784_v35, %v1361_v42 }
 0x1c0   :  { %v1360_v31 = vadd.f32 %v1344_v26, %v1296_v6 }
 0x1c1   :  { %v1786_v52 = vpop.eup %1785  ;;  %v1512_v58 = vsel %vm1496_vm3, %v1377_v12, 0.0 }
 0x1c2   :  { %v1376_v27 = vmul.f32 %v1786_v52, %v1360_v31 }
 0x1c4   :  { %v1511_v49 = vsel %vm1495_vm2, %v1376_v27, 0.0 }
 0x1c5   :  { %v1527_v14 = vadd.f32 %v1526_v4, %v1511_v49 }
 0x1c7   :  { %v1528_v11 = vadd.f32 %v1527_v14, %v1512_v58 }
 0x1c9   :  { %v1529_v51 = vrot.slane %v1528_v11, 4 }
 0x1cb   :  { %v1530_v48 = vadd.f32 %v1529_v51, %v1528_v11 }
 0x1cd   :  { %v1531_v18 = vrot.slane %v1530_v48, 2 }
 0x1cf   :  { %v1532_v3 = vadd.f32 %v1531_v18, %v1530_v48 }
 0x1d1   :  { %v1533_v9 = vrot.slane %v1532_v3, 1 }
 0x1d3   :  { %v1534_v53 = vadd.f32 %v1533_v9, %v1532_v3 }
 0x1d5   :  { %v1535_v20 = vadd.f32 %v1534_v53, %v1513_v5 }
 0x1d7   :  { %1536 = vst [vmem:[#allocation2] sm:$0x1] %v1535_v20 }
 0x1d8 PF:  { %s1813_s3 = smov [#allocation5]  }
 0x1d9   :  { %s1548_s29 = sshll.u32 %s1813_s3, 4  ;;  %s1549_s29 = int_to_ptr.vmem [resolvable:$true] %s1548_s29 }
 0x1da   :  { %s1789_s30 = scalar_lea.vmem %s1549_s29, 16  ;;  %s1793_s5 = scalar_lea.vmem %s1549_s29, 32 }
 0x1db   :  { %p1790_p2 = scmp.ne.s32.totalorder %s1549_s29, %s1789_s30  ;;  %p1794_p3 = scmp.lt.s32.totalorder %s1549_s29, %s1549_s29 }
 0x1dc   :  { %p1795_p4 = scmp.lt.s32.totalorder %s1793_s5, %s1789_s30 }
 0x1de   :  { %v1540_v54 = vld [vmem:[#allocation2] sm:$0x1]  ;;  %p1796_p5 = por %p1795_p4, %p1794_p3 }
 0x1df   :  { %1541 = vst [vmem:[#allocation5] sm:$0x1] %v1540_v54 }
 0x1e0   :  { %p1797_p6 = pnand %p1796_p5, %p1790_p2 }
 0x1e2   :  { %1800 = shalt.err (!%p1797_p6)
}
 0x1e3   :  { %1551 = dma.vmem_to_hbm [thread:$0]  %s1549_s29, 16, %s3622_s4, [#allocation6]  }
 0x1e4   :  { %1809 = dma.done.wait [#allocation6], 16  }
 0x1e5   :  { %1810 = vsyncadd [#allocation6], 4294967280 }
 0x1e6   :  { %1555 = vsyncpa [#allocation6], 1 }

</bundles_post_ra>
